<compile_context>
chip_gen: v5e
topology: v5e:2x2
jax: 0.10.0
libtpu: 0.0.40
codegen_flags: <defaults>
</compile_context>

<pallas_src>
import jax
import jax.numpy as jnp
from jax.experimental import pallas as pl
from jax.experimental.pallas import tpu as pltpu

# ---- small "roberta-base"-like synthetic config (lane-dense, scaled down) ----
VOCAB = 100
MAX_POS = 64
TYPE_VOCAB = 2
HIDDEN = 128          # 768 in the real model; kept a multiple of 128 (full vreg lanes)
NUM_HEADS = 2
HEAD_DIM = HIDDEN // NUM_HEADS   # 64, same head_dim as real roberta-base
INTERMEDIATE = 256
NUM_LAYERS = 2
NUM_CLASSES = 4
CLS_PAD = 128         # classifier logits padded to a lane-dense 128-wide store
LN_EPS = 1e-5


# -------------------- fused Pallas kernel --------------------

def fused_forward_kernel(emb_ref, bias_ref, embg_ref, embb_ref,
                         wqkv_ref, bqkv_ref, wo_ref, bo_ref,
                         ln1g_ref, ln1b_ref,
                         w1_ref, b1_ref, w2_ref, b2_ref, ln2g_ref, ln2b_ref,
                         wpre_ref, bpre_ref, wcls_ref, bcls_ref,
                         logits_ref, hid_ref):
    layer = pl.program_id(1)
    Bt, S, H = emb_ref.shape
    NH, HD = NUM_HEADS, HEAD_DIM

    def layer_norm(y, g, b):                      # f32 in / f32 out
        mu = jnp.mean(y, axis=-1, keepdims=True)
        var = jnp.mean((y - mu) ** 2, axis=-1, keepdims=True)
        return (y - mu) * jax.lax.rsqrt(var + LN_EPS) * g + b

    # ---- embedding LayerNorm, once per batch block (layer step 0) ----
    @pl.when(layer == 0)
    def _():
        hid_ref[...] = layer_norm(
            emb_ref[...].reshape(Bt * S, H).astype(jnp.float32),
            embg_ref[...], embb_ref[...])

    x = hid_ref[...]                              # (Bt*S, H) f32, resident in VMEM
    xb = x.astype(jnp.bfloat16)

    # Fused QKV projection: one (Bt*S, H) @ (H, 3H) matmul (lane-dense N), f32 accumulate.
    # 1/sqrt(HD) is already folded into the Q columns of w_qkv / b_qkv at init time.
    qkv = jnp.dot(xb, wqkv_ref[0], preferred_element_type=jnp.float32) + bqkv_ref[0]

    bias = bias_ref[...]                          # (Bt, 1, S) additive mask bias (precomputed)

    # Per-head attention with a single leading batch dim (= Bt) per einsum.
    ctx_heads = []
    for h in range(NH):
        qh = qkv[:, h * HD:(h + 1) * HD].reshape(Bt, S, HD).astype(jnp.bfloat16)
        kh = qkv[:, H + h * HD:H + (h + 1) * HD].reshape(Bt, S, HD).astype(jnp.bfloat16)
        vh = qkv[:, 2 * H + h * HD:2 * H + (h + 1) * HD].reshape(Bt, S, HD).astype(jnp.bfloat16)

        s = jnp.einsum('bqd,bkd->bqk', qh, kh,
                       preferred_element_type=jnp.float32)   # (Bt, S, S), scale pre-folded
        s = s + bias
        s = s - jnp.max(s, axis=-1, keepdims=True)            # stable softmax in f32
        p = jnp.exp(s)
        p = p * pl.reciprocal(jnp.sum(p, axis=-1, keepdims=True), approx=True)

        ctx = jnp.einsum('bqk,bkd->bqd', p.astype(jnp.bfloat16), vh,
                         preferred_element_type=jnp.float32)  # (Bt, S, HD)
        ctx_heads.append(ctx.reshape(Bt * S, HD))

    # Head-sum folded into the MXU: concat ctx to (Bt*S, NH*HD) then one dot with K = H.
    ctx_flat = jnp.concatenate(ctx_heads, axis=-1).astype(jnp.bfloat16)
    attn_out = jnp.dot(ctx_flat, wo_ref[0],
                       preferred_element_type=jnp.float32) + bo_ref[0]

    h1 = layer_norm(x + attn_out, ln1g_ref[0], ln1b_ref[0])

    ff = jnp.dot(h1.astype(jnp.bfloat16), w1_ref[0],
                 preferred_element_type=jnp.float32) + b1_ref[0]
    # TODO(synk): tanh-approx GELU; HF RoBERTa uses exact erf GELU (tiny numeric delta).
    ff = jax.nn.gelu(ff, approximate=True)
    ff = jnp.dot(ff.astype(jnp.bfloat16), w2_ref[0],
                 preferred_element_type=jnp.float32) + b2_ref[0]

    h2 = layer_norm(h1 + ff, ln2g_ref[0], ln2b_ref[0])
    hid_ref[...] = h2

    # ---- classifier head on the CLS tokens of the whole batch block, last layer step ----
    @pl.when(layer == pl.num_programs(1) - 1)
    def _():
        cls = h2.reshape(Bt, S, H)[:, 0, :]                    # pooler = hidden_state[:, 0], (Bt, H)
        hp = jnp.dot(cls.astype(jnp.bfloat16), wpre_ref[...],
                     preferred_element_type=jnp.float32) + bpre_ref[...]
        hp = jnp.maximum(hp, 0.0)                              # ReLU; Dropout(0.3)=identity at inference
        logits = (jnp.dot(hp.astype(jnp.bfloat16), wcls_ref[...],
                          preferred_element_type=jnp.float32) + bcls_ref[...])
        logits_ref[...] = logits.reshape(Bt, 1, CLS_PAD).astype(logits_ref.dtype)


# -------------------- parameters --------------------

def init_params(key):
    L, H, NH, HD, I = NUM_LAYERS, HIDDEN, NUM_HEADS, HEAD_DIM, INTERMEDIATE
    keys = iter(jax.random.split(key, 40))

    def w(shape, scale=0.02):
        return jax.random.normal(next(keys), shape, jnp.float32) * scale

    # Attention projections stored [in, out] with head h in columns [h*HD:(h+1)*HD].
    # 1/sqrt(HD) folded into the query projection (weight AND bias) at init.
    scale = 1.0 / (HD ** 0.5)
    wq, bq = w((L, H, H)) * scale, w((L, 1, H)) * scale
    wk, bk = w((L, H, H)), w((L, 1, H))
    wv, bv = w((L, H, H)), w((L, 1, H))
    w_qkv = jnp.concatenate([wq, wk, wv], axis=-1).astype(jnp.bfloat16)   # (L, H, 3H) bf16
    b_qkv = jnp.concatenate([bq, bk, bv], axis=-1)                        # (L, 1, 3H) f32

    params = dict(
        word_emb=w((VOCAB, H)),
        pos_emb=w((MAX_POS, H)),
        type_emb=w((TYPE_VOCAB, H)),
        emb_ln_g=jnp.ones((1, H), jnp.float32),
        emb_ln_b=jnp.zeros((1, H), jnp.float32),
        w_qkv=w_qkv, b_qkv=b_qkv,
        wo=w((L, H, H)).astype(jnp.bfloat16), bo=w((L, 1, H)),
        ln1_g=jnp.ones((L, 1, H), jnp.float32), ln1_b=jnp.zeros((L, 1, H), jnp.float32),
        w1=w((L, H, I)).astype(jnp.bfloat16), b1=w((L, 1, I)),
        w2=w((L, I, H)).astype(jnp.bfloat16), b2=w((L, 1, H)),
        ln2_g=jnp.ones((L, 1, H), jnp.float32), ln2_b=jnp.zeros((L, 1, H), jnp.float32),
        w_pre=w((H, H)).astype(jnp.bfloat16), b_pre=w((1, H)),            # pre_classifier
    )
    # classifier (768x4 real), padded to 128 lanes; pad columns zero.
    wc = jnp.zeros((H, CLS_PAD), jnp.float32)
    wc = wc.at[:, :NUM_CLASSES].set(w((H, NUM_CLASSES)))
    params['w_cls'] = wc.astype(jnp.bfloat16)
    params['b_cls'] = jnp.zeros((1, CLS_PAD), jnp.float32)
    return params


# -------------------- forward wrapper --------------------

def roberta_class_forward(params, input_ids, attention_mask, token_type_ids, *, block_b=2):
    B, S = input_ids.shape
    H, I, L = HIDDEN, INTERMEDIATE, NUM_LAYERS
    Bt = block_b
    assert B % Bt == 0, "batch must be divisible by the batch block"

    # Embedding-table gathers stay in plain JAX glue.
    # TODO(synk): HF RoBERTa uses padding-offset position ids (start at padding_idx+1); plain arange here.
    emb = (jnp.take(params['word_emb'], input_ids, axis=0)
           + params['pos_emb'][:S][None, :, :]
           + jnp.take(params['type_emb'], token_type_ids, axis=0))
    # additive attention-mask bias precomputed once (hoisted out of the kernel)
    mask_bias = ((1.0 - attention_mask.astype(jnp.float32)) * -1e9).reshape(B, 1, S)

    lyr3 = lambda b, l: (l, 0, 0)
    fixed2 = lambda b, l: (0, 0)
    batched = lambda b, l: (b, 0, 0)

    in_specs = [
        pl.BlockSpec((Bt, S, H), batched),        # emb
        pl.BlockSpec((Bt, 1, S), batched),        # attention mask bias
        pl.BlockSpec((1, H), fixed2),             # emb_ln_g
        pl.BlockSpec((1, H), fixed2),             # emb_ln_b
        pl.BlockSpec((1, H, 3 * H), lyr3),        # w_qkv (fused)
        pl.BlockSpec((1, 1, 3 * H), lyr3),        # b_qkv (fused)
        pl.BlockSpec((1, H, H), lyr3),            # wo
        pl.BlockSpec((1, 1, H), lyr3),            # bo
        pl.BlockSpec((1, 1, H), lyr3),            # ln1_g
        pl.BlockSpec((1, 1, H), lyr3),            # ln1_b
        pl.BlockSpec((1, H, I), lyr3),            # w1
        pl.BlockSpec((1, 1, I), lyr3),            # b1
        pl.BlockSpec((1, I, H), lyr3),            # w2
        pl.BlockSpec((1, 1, H), lyr3),            # b2
        pl.BlockSpec((1, 1, H), lyr3),            # ln2_g
        pl.BlockSpec((1, 1, H), lyr3),            # ln2_b
        pl.BlockSpec((H, H), fixed2),             # w_pre
        pl.BlockSpec((1, H), fixed2),             # b_pre
        pl.BlockSpec((H, CLS_PAD), fixed2),       # w_cls (128-padded)
        pl.BlockSpec((1, CLS_PAD), fixed2),       # b_cls (128-padded)
    ]

    logits_pad = pl.pallas_call(
        fused_forward_kernel,
        out_shape=jax.ShapeDtypeStruct((B, 1, CLS_PAD), jnp.float32),
        grid_spec=pltpu.PrefetchScalarGridSpec(
            num_scalar_prefetch=0,
            grid=(B // Bt, L),                    # batch blocks parallel, layers sequential carry
            in_specs=in_specs,
            out_specs=pl.BlockSpec((Bt, 1, CLS_PAD), batched),
            scratch_shapes=[pltpu.VMEM((Bt * S, H), jnp.float32)]),   # resident hidden state
        compiler_params=pltpu.CompilerParams(
            dimension_semantics=("parallel", "arbitrary"),
            vmem_limit_bytes=64 * 1024 * 1024),
    )(emb, mask_bias, params['emb_ln_g'], params['emb_ln_b'],
      params['w_qkv'], params['b_qkv'], params['wo'], params['bo'],
      params['ln1_g'], params['ln1_b'], params['w1'], params['b1'],
      params['w2'], params['b2'], params['ln2_g'], params['ln2_b'],
      params['w_pre'], params['b_pre'], params['w_cls'], params['b_cls'])

    return logits_pad.reshape(B, CLS_PAD)[:, :NUM_CLASSES]


if __name__ == "__main__":
    key = jax.random.PRNGKey(0)
    kp, kid = jax.random.split(key)
    params = init_params(kp)

    # B=4 with Bt=2 -> batch-blocked MXU fill AND a parallel grid extent of 2 (both TCs on v7x).
    B, S = 4, 8
    input_ids = jax.random.randint(kid, (B, S), 0, VOCAB, dtype=jnp.int32)
    attention_mask = jnp.ones((B, S), jnp.int32)
    token_type_ids = jnp.zeros((B, S), jnp.int32)

    logits = roberta_class_forward(params, input_ids, attention_mask, token_type_ids, block_b=2)
    logits = jax.block_until_ready(logits)
    assert logits.shape == (B, NUM_CLASSES)
    assert bool(jnp.all(jnp.isfinite(logits)))
    print("KERNEL_OK")
</pallas_src>

<mosaic_0001>
module attributes {stable_mosaic.version = 11 : i64} {
  func.func @fused_forward_kernel(%arg0: i32, %arg1: i32, %arg2: memref<2x8x128xf32, #tpu.memory_space<vmem>>, %arg3: memref<2x1x8xf32, #tpu.memory_space<vmem>>, %arg4: memref<1x128xf32, #tpu.memory_space<vmem>>, %arg5: memref<1x128xf32, #tpu.memory_space<vmem>>, %arg6: memref<1x128x384xbf16, #tpu.memory_space<vmem>>, %arg7: memref<1x1x384xf32, #tpu.memory_space<vmem>>, %arg8: memref<1x128x128xbf16, #tpu.memory_space<vmem>>, %arg9: memref<1x1x128xf32, #tpu.memory_space<vmem>>, %arg10: memref<1x1x128xf32, #tpu.memory_space<vmem>>, %arg11: memref<1x1x128xf32, #tpu.memory_space<vmem>>, %arg12: memref<1x128x256xbf16, #tpu.memory_space<vmem>>, %arg13: memref<1x1x256xf32, #tpu.memory_space<vmem>>, %arg14: memref<1x256x128xbf16, #tpu.memory_space<vmem>>, %arg15: memref<1x1x128xf32, #tpu.memory_space<vmem>>, %arg16: memref<1x1x128xf32, #tpu.memory_space<vmem>>, %arg17: memref<1x1x128xf32, #tpu.memory_space<vmem>>, %arg18: memref<128x128xbf16, #tpu.memory_space<vmem>>, %arg19: memref<1x128xf32, #tpu.memory_space<vmem>>, %arg20: memref<128x128xbf16, #tpu.memory_space<vmem>>, %arg21: memref<1x128xf32, #tpu.memory_space<vmem>>, %arg22: memref<2x1x128xf32, #tpu.memory_space<vmem>>, %arg23: memref<16x128xf32, #tpu.memory_space<vmem>>) attributes {dimension_semantics = [#tpu.dimension_semantics<parallel>, #tpu.dimension_semantics<arbitrary>], iteration_bounds = array<i64: 2, 2>, scalar_prefetch = 0 : i64, scratch_operands = 1 : i64, tpu.core_type = #tpu.core_type<tc>, window_params = [{transform_indices = @transform_0, window_bounds = array<i64: 2, 8, 128>}, {transform_indices = @transform_1, window_bounds = array<i64: 2, 1, 8>}, {pipeline_mode = #tpu.pipeline_mode<synchronous>, transform_indices = @transform_2, window_bounds = array<i64: 1, 128>}, {pipeline_mode = #tpu.pipeline_mode<synchronous>, transform_indices = @transform_3, window_bounds = array<i64: 1, 128>}, {transform_indices = @transform_4, window_bounds = array<i64: 1, 128, 384>}, {transform_indices = @transform_5, window_bounds = array<i64: 1, 1, 384>}, {transform_indices = @transform_6, window_bounds = array<i64: 1, 128, 128>}, {transform_indices = @transform_7, window_bounds = array<i64: 1, 1, 128>}, {transform_indices = @transform_8, window_bounds = array<i64: 1, 1, 128>}, {transform_indices = @transform_9, window_bounds = array<i64: 1, 1, 128>}, {transform_indices = @transform_10, window_bounds = array<i64: 1, 128, 256>}, {transform_indices = @transform_11, window_bounds = array<i64: 1, 1, 256>}, {transform_indices = @transform_12, window_bounds = array<i64: 1, 256, 128>}, {transform_indices = @transform_13, window_bounds = array<i64: 1, 1, 128>}, {transform_indices = @transform_14, window_bounds = array<i64: 1, 1, 128>}, {transform_indices = @transform_15, window_bounds = array<i64: 1, 1, 128>}, {pipeline_mode = #tpu.pipeline_mode<synchronous>, transform_indices = @transform_16, window_bounds = array<i64: 128, 128>}, {pipeline_mode = #tpu.pipeline_mode<synchronous>, transform_indices = @transform_17, window_bounds = array<i64: 1, 128>}, {pipeline_mode = #tpu.pipeline_mode<synchronous>, transform_indices = @transform_18, window_bounds = array<i64: 128, 128>}, {pipeline_mode = #tpu.pipeline_mode<synchronous>, transform_indices = @transform_19, window_bounds = array<i64: 1, 128>}, {transform_indices = @transform_20, window_bounds = array<i64: 2, 1, 128>}]} {
    %c0_i32 = arith.constant 0 : i32
    %0 = arith.cmpi eq, %arg1, %c0_i32 : i32
    %1 = arith.extui %0 : i1 to i32
    %c0_i32_0 = arith.constant 0 : i32
    %2 = arith.cmpi ne, %1, %c0_i32_0 : i32
    scf.if %2 {
      %c0_69 = arith.constant 0 : index
      %c0_70 = arith.constant 0 : index
      %c0_71 = arith.constant 0 : index
      %159 = vector.load %arg2[%c0_69, %c0_70, %c0_71] : memref<2x8x128xf32, #tpu.memory_space<vmem>>, vector<2x8x128xf32>
      %160 = vector.shape_cast %159 : vector<2x8x128xf32> to vector<16x128xf32>
      %c0_72 = arith.constant 0 : index
      %c0_73 = arith.constant 0 : index
      %161 = vector.load %arg4[%c0_72, %c0_73] : memref<1x128xf32, #tpu.memory_space<vmem>>, vector<1x128xf32>
      %c0_74 = arith.constant 0 : index
      %c0_75 = arith.constant 0 : index
      %162 = vector.load %arg5[%c0_74, %c0_75] : memref<1x128xf32, #tpu.memory_space<vmem>>, vector<1x128xf32>
      %cst_76 = arith.constant dense<0.000000e+00> : vector<16xf32>
      %163 = vector.multi_reduction <add>, %160, %cst_76 [1] : vector<16x128xf32> to vector<16xf32>
      %164 = vector.shape_cast %163 : vector<16xf32> to vector<16x1xf32>
      %cst_77 = arith.constant 1.280000e+02 : f32
      %165 = vector.broadcast %cst_77 : f32 to vector<16x1xf32>
      %166 = arith.divf %164, %165 : vector<16x1xf32>
      %167 = vector.broadcast %166 : vector<16x1xf32> to vector<16x128xf32>
      %168 = arith.subf %160, %167 : vector<16x128xf32>
      %169 = arith.mulf %168, %168 : vector<16x128xf32>
      %cst_78 = arith.constant dense<0.000000e+00> : vector<16xf32>
      %170 = vector.multi_reduction <add>, %169, %cst_78 [1] : vector<16x128xf32> to vector<16xf32>
      %171 = vector.shape_cast %170 : vector<16xf32> to vector<16x1xf32>
      %cst_79 = arith.constant 1.280000e+02 : f32
      %172 = vector.broadcast %cst_79 : f32 to vector<16x1xf32>
      %173 = arith.divf %171, %172 : vector<16x1xf32>
      %174 = vector.broadcast %166 : vector<16x1xf32> to vector<16x128xf32>
      %175 = arith.subf %160, %174 : vector<16x128xf32>
      %cst_80 = arith.constant 9.99999974E-6 : f32
      %176 = vector.broadcast %cst_80 : f32 to vector<16x1xf32>
      %177 = arith.addf %173, %176 : vector<16x1xf32>
      %178 = math.rsqrt %177 : vector<16x1xf32>
      %179 = vector.broadcast %178 : vector<16x1xf32> to vector<16x128xf32>
      %180 = arith.mulf %175, %179 : vector<16x128xf32>
      %181 = vector.broadcast %161 : vector<1x128xf32> to vector<16x128xf32>
      %182 = arith.mulf %180, %181 : vector<16x128xf32>
      %183 = vector.broadcast %162 : vector<1x128xf32> to vector<16x128xf32>
      %184 = arith.addf %182, %183 : vector<16x128xf32>
      %c0_81 = arith.constant 0 : index
      %c0_82 = arith.constant 0 : index
      %185 = vector.load %arg23[%c0_81, %c0_82] : memref<16x128xf32, #tpu.memory_space<vmem>>, vector<16x128xf32>
      tpu.vector_store %arg23[%c0_81, %c0_82], %184 {strides = array<i32>} : memref<16x128xf32, #tpu.memory_space<vmem>>, vector<16x128xf32>,
    } else {
    }
    %c0 = arith.constant 0 : index
    %c0_1 = arith.constant 0 : index
    %3 = vector.load %arg23[%c0, %c0_1] : memref<16x128xf32, #tpu.memory_space<vmem>>, vector<16x128xf32>
    %4 = arith.truncf %3 : vector<16x128xf32> to vector<16x128xbf16>
    %c0_2 = arith.constant 0 : index
    %c0_3 = arith.constant 0 : index
    %c0_4 = arith.constant 0 : index
    %5 = vector.load %arg6[%c0_2, %c0_3, %c0_4] : memref<1x128x384xbf16, #tpu.memory_space<vmem>>, vector<1x128x384xbf16>
    %6 = vector.shape_cast %5 : vector<1x128x384xbf16> to vector<128x384xbf16>
    %cst = arith.constant dense<0.000000e+00> : vector<16x384xf32>
    %7 = tpu.matmul %4, %6, %cst {dimension_numbers = #tpu.dot_dimension_numbers<[1], [0], [0], [1], [0, 0, 1, 1], [], []>} : vector<16x128xbf16>, vector<128x384xbf16>, vector<16x384xf32> -> vector<16x384xf32>
    %c0_5 = arith.constant 0 : index
    %c0_6 = arith.constant 0 : index
    %c0_7 = arith.constant 0 : index
    %8 = vector.load %arg7[%c0_5, %c0_6, %c0_7] : memref<1x1x384xf32, #tpu.memory_space<vmem>>, vector<1x1x384xf32>
    %9 = vector.shape_cast %8 : vector<1x1x384xf32> to vector<1x384xf32>
    %10 = vector.broadcast %9 : vector<1x384xf32> to vector<16x384xf32>
    %11 = arith.addf %7, %10 : vector<16x384xf32>
    %c0_8 = arith.constant 0 : index
    %c0_9 = arith.constant 0 : index
    %c0_10 = arith.constant 0 : index
    %12 = vector.load %arg3[%c0_8, %c0_9, %c0_10] : memref<2x1x8xf32, #tpu.memory_space<vmem>>, vector<2x1x8xf32>
    %13 = vector.extract_strided_slice %11 {offsets = [0, 0], sizes = [16, 64], strides = [1, 1]} : vector<16x384xf32> to vector<16x64xf32>
    %14 = vector.shape_cast %13 : vector<16x64xf32> to vector<2x8x64xf32>
    %15 = arith.truncf %14 : vector<2x8x64xf32> to vector<2x8x64xbf16>
    %16 = vector.extract_strided_slice %11 {offsets = [0, 128], sizes = [16, 64], strides = [1, 1]} : vector<16x384xf32> to vector<16x64xf32>
    %17 = vector.shape_cast %16 : vector<16x64xf32> to vector<2x8x64xf32>
    %18 = arith.truncf %17 : vector<2x8x64xf32> to vector<2x8x64xbf16>
    %19 = vector.extract_strided_slice %11 {offsets = [0, 256], sizes = [16, 64], strides = [1, 1]} : vector<16x384xf32> to vector<16x64xf32>
    %20 = vector.shape_cast %19 : vector<16x64xf32> to vector<2x8x64xf32>
    %21 = arith.truncf %20 : vector<2x8x64xf32> to vector<2x8x64xbf16>
    "tpu.trace_start"() <{level = 10 : i32, message = "bqd,bkd->bqk"}> : () -> ()
    %cst_11 = arith.constant dense<0.000000e+00> : vector<2x8x8xf32>
    %22 = tpu.matmul %15, %18, %cst_11 {dimension_numbers = #tpu.dot_dimension_numbers<[2], [2], [1], [1], [0, 0, 0, 1, 1, 1], [0], [0]>} : vector<2x8x64xbf16>, vector<2x8x64xbf16>, vector<2x8x8xf32> -> vector<2x8x8xf32>
    "tpu.trace_stop"() : () -> ()
    %23 = vector.broadcast %12 : vector<2x1x8xf32> to vector<2x8x8xf32>
    %24 = arith.addf %22, %23 : vector<2x8x8xf32>
    %cst_12 = arith.constant dense<0xFF800000> : vector<2x8xf32>
    %25 = vector.multi_reduction <maximumf>, %24, %cst_12 [2] : vector<2x8x8xf32> to vector<2x8xf32>
    %26 = vector.shape_cast %25 : vector<2x8xf32> to vector<2x8x1xf32>
    %27 = vector.broadcast %26 : vector<2x8x1xf32> to vector<2x8x8xf32>
    %28 = arith.subf %24, %27 : vector<2x8x8xf32>
    %29 = math.exp %28 : vector<2x8x8xf32>
    %cst_13 = arith.constant dense<0.000000e+00> : vector<2x8xf32>
    %30 = vector.multi_reduction <add>, %29, %cst_13 [2] : vector<2x8x8xf32> to vector<2x8xf32>
    %31 = vector.shape_cast %30 : vector<2x8xf32> to vector<2x8x1xf32>
    %32 = tpu.reciprocal %31 {approx = true} : vector<2x8x1xf32> -> vector<2x8x1xf32>
    %33 = vector.broadcast %32 : vector<2x8x1xf32> to vector<2x8x8xf32>
    %34 = arith.mulf %29, %33 : vector<2x8x8xf32>
    %35 = arith.truncf %34 : vector<2x8x8xf32> to vector<2x8x8xbf16>
    "tpu.trace_start"() <{level = 10 : i32, message = "bqk,bkd->bqd"}> : () -> ()
    %cst_14 = arith.constant dense<0.000000e+00> : vector<2x8x64xf32>
    %36 = tpu.matmul %35, %21, %cst_14 {dimension_numbers = #tpu.dot_dimension_numbers<[2], [1], [1], [2], [0, 0, 0, 1, 1, 2], [0], [0]>} : vector<2x8x8xbf16>, vector<2x8x64xbf16>, vector<2x8x64xf32> -> vector<2x8x64xf32>
    "tpu.trace_stop"() : () -> ()
    %37 = vector.shape_cast %36 : vector<2x8x64xf32> to vector<16x64xf32>
    %38 = vector.extract_strided_slice %11 {offsets = [0, 64], sizes = [16, 64], strides = [1, 1]} : vector<16x384xf32> to vector<16x64xf32>
    %39 = vector.shape_cast %38 : vector<16x64xf32> to vector<2x8x64xf32>
    %40 = arith.truncf %39 : vector<2x8x64xf32> to vector<2x8x64xbf16>
    %41 = vector.extract_strided_slice %11 {offsets = [0, 192], sizes = [16, 64], strides = [1, 1]} : vector<16x384xf32> to vector<16x64xf32>
    %42 = vector.shape_cast %41 : vector<16x64xf32> to vector<2x8x64xf32>
    %43 = arith.truncf %42 : vector<2x8x64xf32> to vector<2x8x64xbf16>
    %44 = vector.extract_strided_slice %11 {offsets = [0, 320], sizes = [16, 64], strides = [1, 1]} : vector<16x384xf32> to vector<16x64xf32>
    %45 = vector.shape_cast %44 : vector<16x64xf32> to vector<2x8x64xf32>
    %46 = arith.truncf %45 : vector<2x8x64xf32> to vector<2x8x64xbf16>
    "tpu.trace_start"() <{level = 10 : i32, message = "bqd,bkd->bqk"}> : () -> ()
    %cst_15 = arith.constant dense<0.000000e+00> : vector<2x8x8xf32>
    %47 = tpu.matmul %40, %43, %cst_15 {dimension_numbers = #tpu.dot_dimension_numbers<[2], [2], [1], [1], [0, 0, 0, 1, 1, 1], [0], [0]>} : vector<2x8x64xbf16>, vector<2x8x64xbf16>, vector<2x8x8xf32> -> vector<2x8x8xf32>
    "tpu.trace_stop"() : () -> ()
    %48 = vector.broadcast %12 : vector<2x1x8xf32> to vector<2x8x8xf32>
    %49 = arith.addf %47, %48 : vector<2x8x8xf32>
    %cst_16 = arith.constant dense<0xFF800000> : vector<2x8xf32>
    %50 = vector.multi_reduction <maximumf>, %49, %cst_16 [2] : vector<2x8x8xf32> to vector<2x8xf32>
    %51 = vector.shape_cast %50 : vector<2x8xf32> to vector<2x8x1xf32>
    %52 = vector.broadcast %51 : vector<2x8x1xf32> to vector<2x8x8xf32>
    %53 = arith.subf %49, %52 : vector<2x8x8xf32>
    %54 = math.exp %53 : vector<2x8x8xf32>
    %cst_17 = arith.constant dense<0.000000e+00> : vector<2x8xf32>
    %55 = vector.multi_reduction <add>, %54, %cst_17 [2] : vector<2x8x8xf32> to vector<2x8xf32>
    %56 = vector.shape_cast %55 : vector<2x8xf32> to vector<2x8x1xf32>
    %57 = tpu.reciprocal %56 {approx = true} : vector<2x8x1xf32> -> vector<2x8x1xf32>
    %58 = vector.broadcast %57 : vector<2x8x1xf32> to vector<2x8x8xf32>
    %59 = arith.mulf %54, %58 : vector<2x8x8xf32>
    %60 = arith.truncf %59 : vector<2x8x8xf32> to vector<2x8x8xbf16>
    "tpu.trace_start"() <{level = 10 : i32, message = "bqk,bkd->bqd"}> : () -> ()
    %cst_18 = arith.constant dense<0.000000e+00> : vector<2x8x64xf32>
    %61 = tpu.matmul %60, %46, %cst_18 {dimension_numbers = #tpu.dot_dimension_numbers<[2], [1], [1], [2], [0, 0, 0, 1, 1, 2], [0], [0]>} : vector<2x8x8xbf16>, vector<2x8x64xbf16>, vector<2x8x64xf32> -> vector<2x8x64xf32>
    "tpu.trace_stop"() : () -> ()
    %62 = vector.shape_cast %61 : vector<2x8x64xf32> to vector<16x64xf32>
    %63 = tpu.concatenate %37, %62 in 1 : vector<16x64xf32>, vector<16x64xf32> -> vector<16x128xf32>
    %64 = arith.truncf %63 : vector<16x128xf32> to vector<16x128xbf16>
    %c0_19 = arith.constant 0 : index
    %c0_20 = arith.constant 0 : index
    %c0_21 = arith.constant 0 : index
    %65 = vector.load %arg8[%c0_19, %c0_20, %c0_21] : memref<1x128x128xbf16, #tpu.memory_space<vmem>>, vector<1x128x128xbf16>
    %66 = vector.shape_cast %65 : vector<1x128x128xbf16> to vector<128x128xbf16>
    %cst_22 = arith.constant dense<0.000000e+00> : vector<16x128xf32>
    %67 = tpu.matmul %64, %66, %cst_22 {dimension_numbers = #tpu.dot_dimension_numbers<[1], [0], [0], [1], [0, 0, 1, 1], [], []>} : vector<16x128xbf16>, vector<128x128xbf16>, vector<16x128xf32> -> vector<16x128xf32>
    %c0_23 = arith.constant 0 : index
    %c0_24 = arith.constant 0 : index
    %c0_25 = arith.constant 0 : index
    %68 = vector.load %arg9[%c0_23, %c0_24, %c0_25] : memref<1x1x128xf32, #tpu.memory_space<vmem>>, vector<1x1x128xf32>
    %69 = vector.shape_cast %68 : vector<1x1x128xf32> to vector<1x128xf32>
    %70 = vector.broadcast %69 : vector<1x128xf32> to vector<16x128xf32>
    %71 = arith.addf %67, %70 : vector<16x128xf32>
    %72 = arith.addf %3, %71 : vector<16x128xf32>
    %c0_26 = arith.constant 0 : index
    %c0_27 = arith.constant 0 : index
    %c0_28 = arith.constant 0 : index
    %73 = vector.load %arg10[%c0_26, %c0_27, %c0_28] : memref<1x1x128xf32, #tpu.memory_space<vmem>>, vector<1x1x128xf32>
    %74 = vector.shape_cast %73 : vector<1x1x128xf32> to vector<1x128xf32>
    %c0_29 = arith.constant 0 : index
    %c0_30 = arith.constant 0 : index
    %c0_31 = arith.constant 0 : index
    %75 = vector.load %arg11[%c0_29, %c0_30, %c0_31] : memref<1x1x128xf32, #tpu.memory_space<vmem>>, vector<1x1x128xf32>
    %76 = vector.shape_cast %75 : vector<1x1x128xf32> to vector<1x128xf32>
    %cst_32 = arith.constant dense<0.000000e+00> : vector<16xf32>
    %77 = vector.multi_reduction <add>, %72, %cst_32 [1] : vector<16x128xf32> to vector<16xf32>
    %78 = vector.shape_cast %77 : vector<16xf32> to vector<16x1xf32>
    %cst_33 = arith.constant 1.280000e+02 : f32
    %79 = vector.broadcast %cst_33 : f32 to vector<16x1xf32>
    %80 = arith.divf %78, %79 : vector<16x1xf32>
    %81 = vector.broadcast %80 : vector<16x1xf32> to vector<16x128xf32>
    %82 = arith.subf %72, %81 : vector<16x128xf32>
    %83 = arith.mulf %82, %82 : vector<16x128xf32>
    %cst_34 = arith.constant dense<0.000000e+00> : vector<16xf32>
    %84 = vector.multi_reduction <add>, %83, %cst_34 [1] : vector<16x128xf32> to vector<16xf32>
    %85 = vector.shape_cast %84 : vector<16xf32> to vector<16x1xf32>
    %cst_35 = arith.constant 1.280000e+02 : f32
    %86 = vector.broadcast %cst_35 : f32 to vector<16x1xf32>
    %87 = arith.divf %85, %86 : vector<16x1xf32>
    %88 = vector.broadcast %80 : vector<16x1xf32> to vector<16x128xf32>
    %89 = arith.subf %72, %88 : vector<16x128xf32>
    %cst_36 = arith.constant 9.99999974E-6 : f32
    %90 = vector.broadcast %cst_36 : f32 to vector<16x1xf32>
    %91 = arith.addf %87, %90 : vector<16x1xf32>
    %92 = math.rsqrt %91 : vector<16x1xf32>
    %93 = vector.broadcast %92 : vector<16x1xf32> to vector<16x128xf32>
    %94 = arith.mulf %89, %93 : vector<16x128xf32>
    %95 = vector.broadcast %74 : vector<1x128xf32> to vector<16x128xf32>
    %96 = arith.mulf %94, %95 : vector<16x128xf32>
    %97 = vector.broadcast %76 : vector<1x128xf32> to vector<16x128xf32>
    %98 = arith.addf %96, %97 : vector<16x128xf32>
    %99 = arith.truncf %98 : vector<16x128xf32> to vector<16x128xbf16>
    %c0_37 = arith.constant 0 : index
    %c0_38 = arith.constant 0 : index
    %c0_39 = arith.constant 0 : index
    %100 = vector.load %arg12[%c0_37, %c0_38, %c0_39] : memref<1x128x256xbf16, #tpu.memory_space<vmem>>, vector<1x128x256xbf16>
    %101 = vector.shape_cast %100 : vector<1x128x256xbf16> to vector<128x256xbf16>
    %cst_40 = arith.constant dense<0.000000e+00> : vector<16x256xf32>
    %102 = tpu.matmul %99, %101, %cst_40 {dimension_numbers = #tpu.dot_dimension_numbers<[1], [0], [0], [1], [0, 0, 1, 1], [], []>} : vector<16x128xbf16>, vector<128x256xbf16>, vector<16x256xf32> -> vector<16x256xf32>
    %c0_41 = arith.constant 0 : index
    %c0_42 = arith.constant 0 : index
    %c0_43 = arith.constant 0 : index
    %103 = vector.load %arg13[%c0_41, %c0_42, %c0_43] : memref<1x1x256xf32, #tpu.memory_space<vmem>>, vector<1x1x256xf32>
    %104 = vector.shape_cast %103 : vector<1x1x256xf32> to vector<1x256xf32>
    %105 = vector.broadcast %104 : vector<1x256xf32> to vector<16x256xf32>
    %106 = arith.addf %102, %105 : vector<16x256xf32>
    %107 = arith.mulf %106, %106 : vector<16x256xf32>
    %108 = arith.mulf %106, %107 : vector<16x256xf32>
    %cst_44 = arith.constant 4.471500e-02 : f32
    %109 = vector.broadcast %cst_44 : f32 to vector<16x256xf32>
    %110 = arith.mulf %109, %108 : vector<16x256xf32>
    %111 = arith.addf %106, %110 : vector<16x256xf32>
    %cst_45 = arith.constant 0.797884583 : f32
    %112 = vector.broadcast %cst_45 : f32 to vector<16x256xf32>
    %113 = arith.mulf %112, %111 : vector<16x256xf32>
    %114 = math.tanh %113 : vector<16x256xf32>
    %cst_46 = arith.constant 1.000000e+00 : f32
    %115 = vector.broadcast %cst_46 : f32 to vector<16x256xf32>
    %116 = arith.addf %115, %114 : vector<16x256xf32>
    %cst_47 = arith.constant 5.000000e-01 : f32
    %117 = vector.broadcast %cst_47 : f32 to vector<16x256xf32>
    %118 = arith.mulf %117, %116 : vector<16x256xf32>
    %119 = arith.mulf %106, %118 : vector<16x256xf32>
    %120 = arith.truncf %119 : vector<16x256xf32> to vector<16x256xbf16>
    %c0_48 = arith.constant 0 : index
    %c0_49 = arith.constant 0 : index
    %c0_50 = arith.constant 0 : index
    %121 = vector.load %arg14[%c0_48, %c0_49, %c0_50] : memref<1x256x128xbf16, #tpu.memory_space<vmem>>, vector<1x256x128xbf16>
    %122 = vector.shape_cast %121 : vector<1x256x128xbf16> to vector<256x128xbf16>
    %cst_51 = arith.constant dense<0.000000e+00> : vector<16x128xf32>
    %123 = tpu.matmul %120, %122, %cst_51 {dimension_numbers = #tpu.dot_dimension_numbers<[1], [0], [0], [1], [0, 0, 1, 1], [], []>} : vector<16x256xbf16>, vector<256x128xbf16>, vector<16x128xf32> -> vector<16x128xf32>
    %c0_52 = arith.constant 0 : index
    %c0_53 = arith.constant 0 : index
    %c0_54 = arith.constant 0 : index
    %124 = vector.load %arg15[%c0_52, %c0_53, %c0_54] : memref<1x1x128xf32, #tpu.memory_space<vmem>>, vector<1x1x128xf32>
    %125 = vector.shape_cast %124 : vector<1x1x128xf32> to vector<1x128xf32>
    %126 = vector.broadcast %125 : vector<1x128xf32> to vector<16x128xf32>
    %127 = arith.addf %123, %126 : vector<16x128xf32>
    %128 = arith.addf %98, %127 : vector<16x128xf32>
    %c0_55 = arith.constant 0 : index
    %c0_56 = arith.constant 0 : index
    %c0_57 = arith.constant 0 : index
    %129 = vector.load %arg16[%c0_55, %c0_56, %c0_57] : memref<1x1x128xf32, #tpu.memory_space<vmem>>, vector<1x1x128xf32>
    %130 = vector.shape_cast %129 : vector<1x1x128xf32> to vector<1x128xf32>
    %c0_58 = arith.constant 0 : index
    %c0_59 = arith.constant 0 : index
    %c0_60 = arith.constant 0 : index
    %131 = vector.load %arg17[%c0_58, %c0_59, %c0_60] : memref<1x1x128xf32, #tpu.memory_space<vmem>>, vector<1x1x128xf32>
    %132 = vector.shape_cast %131 : vector<1x1x128xf32> to vector<1x128xf32>
    %cst_61 = arith.constant dense<0.000000e+00> : vector<16xf32>
    %133 = vector.multi_reduction <add>, %128, %cst_61 [1] : vector<16x128xf32> to vector<16xf32>
    %134 = vector.shape_cast %133 : vector<16xf32> to vector<16x1xf32>
    %cst_62 = arith.constant 1.280000e+02 : f32
    %135 = vector.broadcast %cst_62 : f32 to vector<16x1xf32>
    %136 = arith.divf %134, %135 : vector<16x1xf32>
    %137 = vector.broadcast %136 : vector<16x1xf32> to vector<16x128xf32>
    %138 = arith.subf %128, %137 : vector<16x128xf32>
    %139 = arith.mulf %138, %138 : vector<16x128xf32>
    %cst_63 = arith.constant dense<0.000000e+00> : vector<16xf32>
    %140 = vector.multi_reduction <add>, %139, %cst_63 [1] : vector<16x128xf32> to vector<16xf32>
    %141 = vector.shape_cast %140 : vector<16xf32> to vector<16x1xf32>
    %cst_64 = arith.constant 1.280000e+02 : f32
    %142 = vector.broadcast %cst_64 : f32 to vector<16x1xf32>
    %143 = arith.divf %141, %142 : vector<16x1xf32>
    %144 = vector.broadcast %136 : vector<16x1xf32> to vector<16x128xf32>
    %145 = arith.subf %128, %144 : vector<16x128xf32>
    %cst_65 = arith.constant 9.99999974E-6 : f32
    %146 = vector.broadcast %cst_65 : f32 to vector<16x1xf32>
    %147 = arith.addf %143, %146 : vector<16x1xf32>
    %148 = math.rsqrt %147 : vector<16x1xf32>
    %149 = vector.broadcast %148 : vector<16x1xf32> to vector<16x128xf32>
    %150 = arith.mulf %145, %149 : vector<16x128xf32>
    %151 = vector.broadcast %130 : vector<1x128xf32> to vector<16x128xf32>
    %152 = arith.mulf %150, %151 : vector<16x128xf32>
    %153 = vector.broadcast %132 : vector<1x128xf32> to vector<16x128xf32>
    %154 = arith.addf %152, %153 : vector<16x128xf32>
    %c0_66 = arith.constant 0 : index
    %c0_67 = arith.constant 0 : index
    %155 = vector.load %arg23[%c0_66, %c0_67] : memref<16x128xf32, #tpu.memory_space<vmem>>, vector<16x128xf32>
    tpu.vector_store %arg23[%c0_66, %c0_67], %154 {strides = array<i32>} : memref<16x128xf32, #tpu.memory_space<vmem>>, vector<16x128xf32>,
    %c1_i32 = arith.constant 1 : i32
    %156 = arith.cmpi eq, %arg1, %c1_i32 : i32
    %157 = arith.extui %156 : i1 to i32
    %c0_i32_68 = arith.constant 0 : i32
    %158 = arith.cmpi ne, %157, %c0_i32_68 : i32
    scf.if %158 {
      %159 = vector.shape_cast %154 : vector<16x128xf32> to vector<2x8x128xf32>
      %160 = vector.extract_strided_slice %159 {offsets = [0, 0, 0], sizes = [2, 1, 128], strides = [1, 1, 1]} : vector<2x8x128xf32> to vector<2x1x128xf32>
      %161 = vector.shape_cast %160 : vector<2x1x128xf32> to vector<2x128xf32>
      %162 = arith.truncf %161 : vector<2x128xf32> to vector<2x128xbf16>
      %c0_69 = arith.constant 0 : index
      %c0_70 = arith.constant 0 : index
      %163 = vector.load %arg18[%c0_69, %c0_70] : memref<128x128xbf16, #tpu.memory_space<vmem>>, vector<128x128xbf16>
      %cst_71 = arith.constant dense<0.000000e+00> : vector<2x128xf32>
      %164 = tpu.matmul %162, %163, %cst_71 {dimension_numbers = #tpu.dot_dimension_numbers<[1], [0], [0], [1], [0, 0, 1, 1], [], []>} : vector<2x128xbf16>, vector<128x128xbf16>, vector<2x128xf32> -> vector<2x128xf32>
      %c0_72 = arith.constant 0 : index
      %c0_73 = arith.constant 0 : index
      %165 = vector.load %arg19[%c0_72, %c0_73] : memref<1x128xf32, #tpu.memory_space<vmem>>, vector<1x128xf32>
      %166 = vector.broadcast %165 : vector<1x128xf32> to vector<2x128xf32>
      %167 = arith.addf %164, %166 : vector<2x128xf32>
      %cst_74 = arith.constant 0.000000e+00 : f32
      %168 = vector.broadcast %cst_74 : f32 to vector<2x128xf32>
      %169 = arith.maximumf %167, %168 : vector<2x128xf32>
      %170 = arith.truncf %169 : vector<2x128xf32> to vector<2x128xbf16>
      %c0_75 = arith.constant 0 : index
      %c0_76 = arith.constant 0 : index
      %171 = vector.load %arg20[%c0_75, %c0_76] : memref<128x128xbf16, #tpu.memory_space<vmem>>, vector<128x128xbf16>
      %cst_77 = arith.constant dense<0.000000e+00> : vector<2x128xf32>
      %172 = tpu.matmul %170, %171, %cst_77 {dimension_numbers = #tpu.dot_dimension_numbers<[1], [0], [0], [1], [0, 0, 1, 1], [], []>} : vector<2x128xbf16>, vector<128x128xbf16>, vector<2x128xf32> -> vector<2x128xf32>
      %c0_78 = arith.constant 0 : index
      %c0_79 = arith.constant 0 : index
      %173 = vector.load %arg21[%c0_78, %c0_79] : memref<1x128xf32, #tpu.memory_space<vmem>>, vector<1x128xf32>
      %174 = vector.broadcast %173 : vector<1x128xf32> to vector<2x128xf32>
      %175 = arith.addf %172, %174 : vector<2x128xf32>
      %176 = vector.shape_cast %175 : vector<2x128xf32> to vector<2x1x128xf32>
      %c0_80 = arith.constant 0 : index
      %c0_81 = arith.constant 0 : index
      %c0_82 = arith.constant 0 : index
      %177 = vector.load %arg22[%c0_80, %c0_81, %c0_82] : memref<2x1x128xf32, #tpu.memory_space<vmem>>, vector<2x1x128xf32>
      tpu.vector_store %arg22[%c0_80, %c0_81, %c0_82], %176 {strides = array<i32>} : memref<2x1x128xf32, #tpu.memory_space<vmem>>, vector<2x1x128xf32>,
    } else {
    }
    return
  }
  func.func @transform_0(%arg0: i32, %arg1: i32) -> (i32, i32, i32) {
    %c0_i32 = arith.constant 0 : i32
    %c0_i32_0 = arith.constant 0 : i32
    %c0_i32_1 = arith.constant 0 : i32
    return %arg0, %c0_i32, %c0_i32_0 : i32, i32, i32
  }
  func.func @transform_1(%arg0: i32, %arg1: i32) -> (i32, i32, i32) {
    %c0_i32 = arith.constant 0 : i32
    %c0_i32_0 = arith.constant 0 : i32
    %c0_i32_1 = arith.constant 0 : i32
    return %arg0, %c0_i32, %c0_i32_0 : i32, i32, i32
  }
  func.func @transform_2(%arg0: i32, %arg1: i32) -> (i32, i32) {
    %c0_i32 = arith.constant 0 : i32
    %c0_i32_0 = arith.constant 0 : i32
    %c0_i32_1 = arith.constant 0 : i32
    return %c0_i32, %c0_i32_0 : i32, i32
  }
  func.func @transform_3(%arg0: i32, %arg1: i32) -> (i32, i32) {
    %c0_i32 = arith.constant 0 : i32
    %c0_i32_0 = arith.constant 0 : i32
    %c0_i32_1 = arith.constant 0 : i32
    return %c0_i32, %c0_i32_0 : i32, i32
  }
  func.func @transform_4(%arg0: i32, %arg1: i32) -> (i32, i32, i32) {
    %c0_i32 = arith.constant 0 : i32
    %c0_i32_0 = arith.constant 0 : i32
    %c0_i32_1 = arith.constant 0 : i32
    return %arg1, %c0_i32, %c0_i32_0 : i32, i32, i32
  }
  func.func @transform_5(%arg0: i32, %arg1: i32) -> (i32, i32, i32) {
    %c0_i32 = arith.constant 0 : i32
    %c0_i32_0 = arith.constant 0 : i32
    %c0_i32_1 = arith.constant 0 : i32
    return %arg1, %c0_i32, %c0_i32_0 : i32, i32, i32
  }
  func.func @transform_6(%arg0: i32, %arg1: i32) -> (i32, i32, i32) {
    %c0_i32 = arith.constant 0 : i32
    %c0_i32_0 = arith.constant 0 : i32
    %c0_i32_1 = arith.constant 0 : i32
    return %arg1, %c0_i32, %c0_i32_0 : i32, i32, i32
  }
  func.func @transform_7(%arg0: i32, %arg1: i32) -> (i32, i32, i32) {
    %c0_i32 = arith.constant 0 : i32
    %c0_i32_0 = arith.constant 0 : i32
    %c0_i32_1 = arith.constant 0 : i32
    return %arg1, %c0_i32, %c0_i32_0 : i32, i32, i32
  }
  func.func @transform_8(%arg0: i32, %arg1: i32) -> (i32, i32, i32) {
    %c0_i32 = arith.constant 0 : i32
    %c0_i32_0 = arith.constant 0 : i32
    %c0_i32_1 = arith.constant 0 : i32
    return %arg1, %c0_i32, %c0_i32_0 : i32, i32, i32
  }
  func.func @transform_9(%arg0: i32, %arg1: i32) -> (i32, i32, i32) {
    %c0_i32 = arith.constant 0 : i32
    %c0_i32_0 = arith.constant 0 : i32
    %c0_i32_1 = arith.constant 0 : i32
    return %arg1, %c0_i32, %c0_i32_0 : i32, i32, i32
  }
  func.func @transform_10(%arg0: i32, %arg1: i32) -> (i32, i32, i32) {
    %c0_i32 = arith.constant 0 : i32
    %c0_i32_0 = arith.constant 0 : i32
    %c0_i32_1 = arith.constant 0 : i32
    return %arg1, %c0_i32, %c0_i32_0 : i32, i32, i32
  }
  func.func @transform_11(%arg0: i32, %arg1: i32) -> (i32, i32, i32) {
    %c0_i32 = arith.constant 0 : i32
    %c0_i32_0 = arith.constant 0 : i32
    %c0_i32_1 = arith.constant 0 : i32
    return %arg1, %c0_i32, %c0_i32_0 : i32, i32, i32
  }
  func.func @transform_12(%arg0: i32, %arg1: i32) -> (i32, i32, i32) {
    %c0_i32 = arith.constant 0 : i32
    %c0_i32_0 = arith.constant 0 : i32
    %c0_i32_1 = arith.constant 0 : i32
    return %arg1, %c0_i32, %c0_i32_0 : i32, i32, i32
  }
  func.func @transform_13(%arg0: i32, %arg1: i32) -> (i32, i32, i32) {
    %c0_i32 = arith.constant 0 : i32
    %c0_i32_0 = arith.constant 0 : i32
    %c0_i32_1 = arith.constant 0 : i32
    return %arg1, %c0_i32, %c0_i32_0 : i32, i32, i32
  }
  func.func @transform_14(%arg0: i32, %arg1: i32) -> (i32, i32, i32) {
    %c0_i32 = arith.constant 0 : i32
    %c0_i32_0 = arith.constant 0 : i32
    %c0_i32_1 = arith.constant 0 : i32
    return %arg1, %c0_i32, %c0_i32_0 : i32, i32, i32
  }
  func.func @transform_15(%arg0: i32, %arg1: i32) -> (i32, i32, i32) {
    %c0_i32 = arith.constant 0 : i32
    %c0_i32_0 = arith.constant 0 : i32
    %c0_i32_1 = arith.constant 0 : i32
    return %arg1, %c0_i32, %c0_i32_0 : i32, i32, i32
  }
  func.func @transform_16(%arg0: i32, %arg1: i32) -> (i32, i32) {
    %c0_i32 = arith.constant 0 : i32
    %c0_i32_0 = arith.constant 0 : i32
    %c0_i32_1 = arith.constant 0 : i32
    return %c0_i32, %c0_i32_0 : i32, i32
  }
  func.func @transform_17(%arg0: i32, %arg1: i32) -> (i32, i32) {
    %c0_i32 = arith.constant 0 : i32
    %c0_i32_0 = arith.constant 0 : i32
    %c0_i32_1 = arith.constant 0 : i32
    return %c0_i32, %c0_i32_0 : i32, i32
  }
  func.func @transform_18(%arg0: i32, %arg1: i32) -> (i32, i32) {
    %c0_i32 = arith.constant 0 : i32
    %c0_i32_0 = arith.constant 0 : i32
    %c0_i32_1 = arith.constant 0 : i32
    return %c0_i32, %c0_i32_0 : i32, i32
  }
  func.func @transform_19(%arg0: i32, %arg1: i32) -> (i32, i32) {
    %c0_i32 = arith.constant 0 : i32
    %c0_i32_0 = arith.constant 0 : i32
    %c0_i32_1 = arith.constant 0 : i32
    return %c0_i32, %c0_i32_0 : i32, i32
  }
  func.func @transform_20(%arg0: i32, %arg1: i32) -> (i32, i32, i32) {
    %c0_i32 = arith.constant 0 : i32
    %c0_i32_0 = arith.constant 0 : i32
    %c0_i32_1 = arith.constant 0 : i32
    return %arg0, %c0_i32, %c0_i32_0 : i32, i32, i32
  }
}

</mosaic_0001>

<bundles_post_ra>
// kernel: tpu_custom_call.1
= control target key start
LH: loop header
LB: loop body
LE: loop exit
PB: predicated region body
PF: predicated region fallthrough
CT: control target
= control target key end

     0   :  { %s4707_s0 = inlined_call_operand.hbm [shape: f32[4,8,128], index: 0, kind: input, shape index: {}]   ;;  %s4708_s1 = inlined_call_operand.hbm [shape: f32[4,1,8], index: 1, kind: input, shape index: {}]   ;;  %s4709_s2 = inlined_call_operand.hbm [shape: f32[1,128], index: 2, kind: input, shape index: {}]   ;;  %s4710_s3 = inlined_call_operand.hbm [shape: f32[1,128], index: 3, kind: input, shape index: {}]   ;;  %s4711_s4 = inlined_call_operand.hbm [shape: bf16[2,128,384], index: 4, kind: input, shape index: {}]   ;;  %s4712_s5 = inlined_call_operand.hbm [shape: f32[2,1,384], index: 5, kind: input, shape index: {}]   ;;  %s4713_s6 = inlined_call_operand.hbm [shape: bf16[2,128,128], index: 6, kind: input, shape index: {}]   ;;  %s4714_s7 = inlined_call_operand.vmem [shape: f32[2,1,128], index: 7, kind: input, shape index: {}]   ;;  %s4715_s8 = inlined_call_operand.hbm [shape: f32[2,1,128], index: 8, kind: input, shape index: {}]   ;;  %s4716_s9 = inlined_call_operand.vmem [shape: f32[2,1,128], index: 9, kind: input, shape index: {}]   ;;  %s4717_s10 = inlined_call_operand.hbm [shape: bf16[2,128,256], index: 10, kind: input, shape index: {}]   ;;  %s4718_s11 = inlined_call_operand.vmem [shape: f32[2,1,256], index: 11, kind: input, shape index: {}]   ;;  %s4719_s12 = inlined_call_operand.hbm [shape: bf16[2,256,128], index: 12, kind: input, shape index: {}]   ;;  %s4720_s13 = inlined_call_operand.vmem [shape: f32[2,1,128], index: 13, kind: input, shape index: {}]   ;;  %s4721_s14 = inlined_call_operand.vmem [shape: f32[2,1,128], index: 14, kind: input, shape index: {}]   ;;  %s4722_s15 = inlined_call_operand.vmem [shape: f32[2,1,128], index: 15, kind: input, shape index: {}]   ;;  %s4723_s16 = inlined_call_operand.hbm [shape: bf16[128,128], index: 16, kind: input, shape index: {}]   ;;  %s4724_s17 = inlined_call_operand.vmem [shape: f32[1,128], index: 17, kind: input, shape index: {}]   ;;  %s4725_s18 = inlined_call_operand.hbm [shape: bf16[128,128], index: 18, kind: input, shape index: {}]   ;;  %s4726_s19 = inlined_call_operand.vmem [shape: f32[1,128], index: 19, kind: input, shape index: {}]   ;;  %s4727_s20 = inlined_call_operand.hbm [shape: f32[4,1,128], index: 20, kind: output, shape index: {}]  }
   0x1   :  { %4762 = sst [smem:[#allocation55_spill]] %s4707_s0 }
   0x2   :  { %4763 = sst [smem:[#allocation56_spill]] %s4708_s1 }
   0x3   :  { %4764 = sst [smem:[#allocation57_spill]] %s4709_s2 }
   0x4   :  { %4765 = sst [smem:[#allocation58_spill]] %s4710_s3 }
   0x5   :  { %4766 = sst [smem:[#allocation59_spill]] %s4711_s4 }
   0x6   :  { %4767 = sst [smem:[#allocation60_spill]] %s4712_s5 }
   0x7   :  { %4768 = sst [smem:[#allocation61_spill]] %s4713_s6 }
   0x8   :  { %4769 = sst [smem:[#allocation62_spill]] %s4714_s7 }
   0x9   :  { %4770 = sst [smem:[#allocation63_spill]] %s4715_s8 }
   0xa   :  { %4771 = sst [smem:[#allocation64_spill]] %s4716_s9 }
   0xb   :  { %4772 = sst [smem:[#allocation65_spill]] %s4717_s10 }
   0xc   :  { %4773 = sst [smem:[#allocation66_spill]] %s4718_s11 }
   0xd   :  { %4774 = sst [smem:[#allocation67_spill]] %s4719_s12 }
   0xe   :  { %4775 = sst [smem:[#allocation68_spill]] %s4720_s13 }
   0xf   :  { %4776 = sst [smem:[#allocation69_spill]] %s4721_s14 }
  0x10   :  { %4777 = sst [smem:[#allocation70_spill]] %s4722_s15 }
  0x11   :  { %4778 = sst [smem:[#allocation71_spill]] %s4723_s16 }
  0x12   :  { %4779 = sst [smem:[#allocation72_spill]] %s4724_s17 }
  0x13   :  { %4780 = sst [smem:[#allocation73_spill]] %s4725_s18 }
  0x14   :  { %4781 = sst [smem:[#allocation74_spill]] %s4726_s19 }
  0x15   :  { %4782 = sst [smem:[#allocation75_spill]] %s4727_s20 }
  0x16   :  { %25 = vsyncpa [#allocation4], 0 }
  0x17   :  { %27 = vsyncpa [#allocation4 + $0x1], 0 }
  0x18   :  { %28 = vsyncpa [#allocation7], 0 }
  0x19   :  { %30 = vsyncpa [#allocation7 + $0x1], 0 }
  0x1a   :  { %31 = vsyncpa [#allocation10], 0 }
  0x1b   :  { %32 = vsyncpa [#allocation19], 0 }
  0x1c   :  { %33 = vsyncpa [#allocation5], 0 }
  0x1d   :  { %35 = vsyncpa [#allocation5 + $0x1], 0  ;;  %s4020_s1 = smov 0   ;;  %s4022_s22 = smov 0  }
  0x1e   :  { %s4024_s23 = smov 0   ;;  %s4026_s24 = smov 0  }
  0x1f   :  { %s4028_s2 = smov 0   ;;  %s4030_s25 = smov 0  }
  0x20   :  { %s4032_s3 = smov 0   ;;  %s4034_s26 = smov 0  }
  0x21   :  { %s4036_s27 = smov 0   ;;  %s4038_s28 = smov 0  }
  0x22   :  { %s4040_s4 = smov 0  }
  0x23 LB: > { %4783 = sst [smem:[#allocation34_spill]] %s3860_s22  ;;  %s4074_s29 = sadd.s32 4294967295, %s3896_s4   ;;  %s3896_s4 = sphi %s4040_s4, %s41_s4   ;;  %s3892_s28 = sphi %s4038_s28, %s4882_s28   ;;  %s3888_s27 = sphi %s4036_s27, %s4881_s27   ;;  %s3884_s26 = sphi %s4034_s26, %s4880_s26   ;;  %s3880_s3 = sphi %s4032_s3, %s4879_s3   ;;  %s3876_s25 = sphi %s4030_s25, %s4878_s25   ;;  %s3872_s2 = sphi %s4028_s2, %s4877_s2   ;;  %s3868_s24 = sphi %s4026_s24, %s4876_s24   ;;  %s3864_s23 = sphi %s4024_s23, %s4875_s23   ;;  %s3860_s22 = sphi %s4022_s22, %s4874_s22   ;;  %s3856_s1 = sphi %s4020_s1, %s4873_s1  }
  0x24   : > { %4784 = sst [smem:[#allocation35_spill]] %s3864_s23  ;;  %p167_p0 = scmp.ne.s32.totalorder %s3860_s22, %s3856_s1 }
  0x25   : > { %4785 = sst [smem:[#allocation36_spill]] %s3868_s24  ;;  %p4731_p1 = scmp.eq.s32.totalorder %s4074_s29, 0 }
  0x26   : > { %4786 = sst [smem:[#allocation37_spill]] %s3872_s2  ;;  %p561_p2 = scmp.eq.s32.totalorder %s4074_s29, 3 }
  0x27   : > { %4787 = sst [smem:[#allocation38_spill]] %s3876_s25  ;;  %p2665_p3 = scmp.ge.s32.totalorder %s3896_s4, 1 }
  0x28   : > { %4788 = sst [smem:[#allocation39_spill]] %s3880_s3  ;;  %p574_p4 = scmp.lt.s32.totalorder %s3896_s4, 5 }
  0x29   : > { %4789 = sst [smem:[#allocation40_spill]] %s3884_s26  ;;  %p4083_p5 = por %p167_p0, %p4731_p1 }
  0x2a   : > { %4790 = sst [smem:[#allocation41_spill]] %s3888_s27  ;;  %p4087_p6 = pnand %p2665_p3, %p574_p4 }
  0x2b   : > { %4791 = sst [smem:[#allocation42_spill]] %s3892_s28  ;;  %s3898_s19 = smov [#allocation8]  }
  0x2c   : > { %4792 = sst [smem:[#allocation43_spill]] %s3896_s4  ;;  %p3156_p7 = pneg %p4087_p6 }
  0x2d   : > { %4793 = sst [smem:[#allocation44_spill]] %s4074_s29  ;;  %s588_s17 = sshll.u32 %s3898_s19, 4  ;;  %s589_s17 = int_to_ptr.vmem [resolvable:$true] %s588_s17 }
  0x2e   : > { %s4794_s30 = scalar_select %p4083_p5, 1, 0 }
  0x2f   : > { %s4796_s0 = scalar_select %p4087_p6, 1, 0 }
  0x30   : > { %4795 = sst [smem:[#allocation45_spill]] %s4794_s30  ;;  %p4098_p8 = pnand %p3156_p7, %p4731_p1 }
  0x31   : > { %4797 = sst [smem:[#allocation46_spill]] %s4796_s0  ;;  %s50_s1 = sadd.s32 1, %s3888_s27 }
  0x32   : > { %s4798_s20 = sld [smem:[#allocation57_spill]]  ;;  %p51_p9 = scmp.ge.s32.totalorder %s50_s1, 2 }
  0x33   : > { %s53_s19 = sadd.s32 1, %s3892_s28  ;;  %s60_s15 = sadd.s32 1, %s3876_s25 }
  0x34   : > { %p67_p10 = scmp.ne.s32.totalorder %s3876_s25, %s3872_s2  ;;  %s4884_s1 = smov (%p51_p9, %s50_s1), 0 }
  0x35   : > { %4800 = sst [smem:[#allocation47_spill]] %s4884_s1  ;;  %s4886_s19 = smov (!%p51_p9, %s53_s19), %s3892_s28 }
  0x36   : > { %p4730_p11 = scmp.eq.s32.totalorder %s3896_s4, 0  ;;  %p4733_p12 = scmp.ne.s32.totalorder %s3872_s2, %s3868_s24 }
  0x37   : > { %p55_p13 = scmp.ge.s32.totalorder %s4886_s19, 2  ;;  %p161_p7 = scmp.ne.s32.totalorder %s3864_s23, %s3860_s22 }
  0x38   : > { %s586_s26 = sshll.u32 %s4798_s20, 4  ;;  %s2664_s20 = sadd.s32 4294967294, %s3896_s4   ;;  %s587_s26 = int_to_ptr.hbm [resolvable:$true] %s586_s26 }
  0x39   : > { %3159 = dma.hbm_to_vmem [thread:$0]  (!%p4098_p8), %s587_s26, 16, %s589_s17, [#allocation7]  }
  0x3a   : > { %s151_s17 = ssub.s32 %s3888_s27, %s4884_s1  ;;  %p4123_p0 = por %p4730_p11, %p67_p10 }
  0x3b   : > { %p4132_p3 = por %p4731_p1, %p4733_p12  ;;  %s4888_s19 = smov (%p55_p13, %s4886_s19), 0 }
  0x3c   : > { %4804 = sst [smem:[#allocation49_spill]] %s4888_s19  ;;  %p152_p4 = scmp.eq.s32.totalorder %s151_s17, 0 }
  0x3d   : > { %s4802_s14 = scalar_select %p4132_p3, 1, 0 }
  0x3e   : > { %s154_s1 = sadd.s32 1, %s3864_s23  ;;  %s57_s11 = ssub.s32 %s3892_s28, %s4888_s19 }
  0x3f   : > { %4803 = sst [smem:[#allocation48_spill]] %s4802_s14  ;;  %p58_p9 = scmp.eq.s32.totalorder %s57_s11, 0 }
  0x40   : > { %p4148_p11 = por %p561_p2, %p67_p10  ;;  %p4809_p13 = scmp.eq.s32.totalorder %s3896_s4, 0 }
  0x41   : > { %s4153_s9 = scalar_select %p152_p4, %s3864_s23, %s154_s1  }
  0x42   : > { %s4805_s13 = scalar_select %p4148_p11, 1, 0 }
  0x43   : > { %4807 = sst [smem:[#allocation51_spill]] %s4153_s9  ;;  %p4160_p1 = por %p161_p7, %p4809_p13 }
  0x44   : > { %4806 = sst [smem:[#allocation50_spill]] %s4805_s13  ;;  %p567_p12 = scmp.eq.s32.totalorder %s2664_s20, 3 }
  0x45   : > { %s4156_s7 = scalar_select %p58_p9, %s3876_s25, %s60_s15  }
  0x46   : > { %p3202_p5 = scmp.lt.s32.totalorder %s3896_s4, 4  ;;  %s645_s11 = sand.u32 1, %s3896_s4  }
  0x47   : > { %4808 = sst [smem:[#allocation52_spill]] %s4156_s7  ;;  %p4811_p3 = scmp.ne.s32.totalorder %s3872_s2, %s3868_s24 }
  0x48   : > { %s647_s1 = sand.u32 1, %s3876_s25   ;;  %s3032_s19 = sshll.u32 %s3892_s28, 4 }
  0x49   : > { %p4169_p6 = por %p567_p12, %p4811_p3  ;;  %s2671_s15 = sshll.u32 %s647_s1, 4 }
  0x4a   : > { %s4814_s13 = sld [smem:[#allocation55_spill]]  ;;  %s649_s20 = scalar_lea.vmem [#allocation3], %s2671_s15 }
  0x4b   : > { %s4812_s17 = scalar_select %p4169_p6, 1, 0 }
  0x4c   : > { %s657_s14 = sshll.u32 %s649_s20, 4  ;;  %p4182_p2 = pnand %p3202_p5, %p4123_p0  ;;  %s658_s14 = int_to_ptr.vmem [resolvable:$true] %s657_s14 }
  0x4d   : > { %4813 = sst [smem:[#allocation53_spill]] %s4812_s17  ;;  %s4186_s25 = scalar_lea.sflag [#allocation4], %s645_s11 }
  0x4e   : > { %s4752_s17 = smov 128   ;;  %s4753_s7 = smov 8  }
  0x4f   : > { %s2674_s9 = sshll.u32 %s647_s1, 1  ;;  %p4198_p10 = pnand %p3202_p5, %p4160_p1 }
  0x50   : > { %s654_s30 = scalar_lea.hbm %s4814_s13, %s3032_s19  ;;  %s671_s19 = scalar_lea.vmem [#allocation6], %s2674_s9 }
  0x51   : > { %s655_s22 = sshll.u32 %s654_s30, 4  ;;  %s2675_s30 = sshll.u32 %s3892_s28, 1  ;;  %s656_s22 = int_to_ptr.hbm [resolvable:$true] %s655_s22 }
  0x52   : > { %3172 = dma.hbm_to_vmem [thread:$0]  (!%p4182_p2), %s656_s22, 256, %s658_s14, %s4186_s25, %s4752_s17, %s4752_s17, %s4753_s7  }
  0x53   : > { %s678_s26 = sshll.u32 %s671_s19, 4  ;;  %s4817_s2 = sld [smem:[#allocation56_spill]]  ;;  %s679_s26 = int_to_ptr.vmem [resolvable:$true] %s678_s26 }
  0x54   : > { %s4206_s12 = scalar_lea.sflag [#allocation7], %s645_s11  ;;  %s3901_s14 = smov 16  }
  0x55   : > { %s3902_s22 = smov 1   ;;  %s4212_s3 = sand.u32 1, %s3864_s23  }
  0x56   : > { %s3117_s1 = smul.u32 192, %s3888_s27  ;;  %s3903_s24 = smov 192  }
  0x57   : > { %s3116_s9 = smul.u32 192, %s4212_s3  ;;  %s4820_s5 = sld [smem:[#allocation60_spill]] }
  0x58   : > { %s3118_s17 = smul.u32 3, %s4212_s3  ;;  %s4821_s6 = sld [smem:[#allocation61_spill]] }
  0x59   : > { %s675_s29 = scalar_lea.hbm %s4817_s2, %s2675_s30  ;;  %s692_s15 = scalar_lea.vmem [#allocation11], %s3116_s9 }
  0x5a   : > { %s676_s0 = sshll.u32 %s675_s29, 4  ;;  %s4818_s29 = sld [smem:[#allocation59_spill]]  ;;  %s677_s0 = int_to_ptr.hbm [resolvable:$true] %s676_s0 }
  0x5b   : > { %3175 = dma.hbm_to_vmem [thread:$0]  (!%p4182_p2), %s677_s0, 32, %s679_s26, %s4206_s12, %s3901_s14, %s3901_s14, %s3902_s22  }
  0x5c   : > { %s700_s20 = sshll.u32 %s692_s15, 4  ;;  %s3904_s0 = smov 12   ;;  %s701_s20 = int_to_ptr.vmem [resolvable:$true] %s700_s20 }
  0x5d   : > { %s3119_s26 = smul.u32 3, %s3888_s27  ;;  %s714_s14 = scalar_lea.vmem [#allocation12], %s3118_s17 }
  0x5e   : > { %s722_s22 = sshll.u32 %s714_s14, 4  ;;  %s4819_s30 = sld [smem:[#allocation58_spill]]  ;;  %s723_s22 = int_to_ptr.vmem [resolvable:$true] %s722_s22 }
  0x5f   : > { %s718_s15 = scalar_lea.hbm %s4820_s5, %s3119_s26  ;;  %s4822_s8 = sld [smem:[#allocation63_spill]] }
  0x60   : > { %s697_s19 = scalar_lea.hbm %s4818_s29, %s3117_s1  ;;  %s720_s7 = sshll.u32 %s718_s15, 4  ;;  %s721_s7 = int_to_ptr.hbm [resolvable:$true] %s720_s7 }
  0x61   : > { %s698_s11 = sshll.u32 %s697_s19, 4  ;;  %s4823_s16 = sld [smem:[#allocation71_spill]]  ;;  %s699_s11 = int_to_ptr.hbm [resolvable:$true] %s698_s11 }
  0x62   : > { %3178 = dma.hbm_to_vmem [thread:$0]  (!%p4198_p10), %s699_s11, 3072, %s701_s20, %s4186_s25, %s3903_s24, %s3903_s24, %s3904_s0  }
  0x63   : > { %3181 = dma.hbm_to_vmem [thread:$0]  (!%p4198_p10), %s721_s7, 48, %s723_s22, %s4206_s12  }
  0x64   : > { %s598_s29 = sshll.u32 %s4819_s30, 4  ;;  %s3905_s11 = smov [#allocation9]   ;;  %s599_s29 = int_to_ptr.hbm [resolvable:$true] %s598_s29 }
  0x65   : > { %s600_s17 = sshll.u32 %s3905_s11, 4  ;;  %s2677_s20 = sshll.u32 %s4212_s3, 6  ;;  %s601_s17 = int_to_ptr.vmem [resolvable:$true] %s600_s17 }
  0x66   : > { %3162 = dma.hbm_to_vmem [thread:$0]  (!%p4098_p8), %s599_s29, 16, %s601_s17, [#allocation10]  }
  0x67   : > { %s3033_s24 = sshll.u32 %s3888_s27, 6  ;;  %s733_s1 = scalar_lea.vmem [#allocation13], %s2677_s20 }
  0x68   : > { %s738_s26 = scalar_lea.hbm %s4821_s6, %s3033_s24  ;;  %s741_s30 = sshll.u32 %s733_s1, 4  ;;  %s742_s30 = int_to_ptr.vmem [resolvable:$true] %s741_s30 }
  0x69   : > { %s739_s2 = sshll.u32 %s738_s26, 4  ;;  %s4754_s7 = smov 64   ;;  %s740_s2 = int_to_ptr.hbm [resolvable:$true] %s739_s2 }
  0x6a   : > { %s3907_s22 = smov 4   ;;  %s763_s19 = scalar_lea.hbm %s4822_s8, %s3888_s27 }
  0x6b   : > { %3184 = dma.hbm_to_vmem [thread:$0]  (!%p4198_p10), %s740_s2, 1024, %s742_s30, %s4186_s25, %s4754_s7, %s4754_s7, %s3907_s22  }
  0x6c   : > { %s765_s15 = sshll.u32 %s763_s19, 4  ;;  %s760_s11 = scalar_lea.vmem [#allocation14], %s4212_s3  ;;  %s766_s15 = int_to_ptr.hbm [resolvable:$true] %s765_s15 }
  0x6d   : > { %s767_s17 = sshll.u32 %s760_s11, 4  ;;  %s609_s0 = sshll.u32 %s4823_s16, 4  ;;  %s768_s17 = int_to_ptr.vmem [resolvable:$true] %s767_s17  ;;  %s610_s0 = int_to_ptr.hbm [resolvable:$true] %s609_s0 }
  0x6e   : > { %3187 = dma.hbm_to_vmem [thread:$0]  (!%p4198_p10), %s766_s15, 16, %s768_s17, %s4206_s12  }
  0x6f   : > { %s3908_s14 = smov [#allocation17]   ;;  %s4824_s18 = sld [smem:[#allocation73_spill]] }
  0x70   : > { %s611_s26 = sshll.u32 %s3908_s14, 4  ;;  %s3909_s29 = smov [#allocation18]   ;;  %s612_s26 = int_to_ptr.vmem [resolvable:$true] %s611_s26 }
  0x71   : > { %3165 = dma.hbm_to_vmem [thread:$0]  (!%p4098_p8), %s610_s0, 1024, %s612_s26, [#allocation10], %s4754_s7, %s4754_s7, %s3907_s22  }
  0x72   : > { %s628_s9 = sshll.u32 %s3909_s29, 4  ;;  %s2680_s19 = sshll.u32 %s4212_s3, 7  ;;  %s629_s9 = int_to_ptr.vmem [resolvable:$true] %s628_s9 }
  0x73   : > { %s3034_s15 = sshll.u32 %s3888_s27, 7  ;;  %s784_s11 = scalar_lea.vmem [#allocation15], %s2680_s19 }
  0x74   : > { %s792_s17 = sshll.u32 %s784_s11, 4  ;;  %s4825_s10 = sld [smem:[#allocation65_spill]]  ;;  %s793_s17 = int_to_ptr.vmem [resolvable:$true] %s792_s17 }
  0x75   : > { %s626_s30 = sshll.u32 %s4824_s18, 4  ;;  %s4826_s2 = sld [smem:[#allocation67_spill]]  ;;  %s627_s30 = int_to_ptr.hbm [resolvable:$true] %s626_s30 }
  0x76   : > { %3168 = dma.hbm_to_vmem [thread:$0]  (!%p4098_p8), %s627_s30, 1024, %s629_s9, [#allocation19], %s4754_s7, %s4754_s7, %s3907_s22  }
  0x77   : > { %s4827_s1 = smov 8   ;;  %s4828_s29 = smov 128  }
  0x78   : > { %s813_s9 = scalar_lea.vmem [#allocation16], %s2680_s19  ;;  %s4829_s11 = smov 64  }
  0x79   : > { %s821_s7 = sshll.u32 %s813_s9, 4  ;;  %s4830_s20 = sld [smem:[#allocation46_spill]]  ;;  %s822_s7 = int_to_ptr.vmem [resolvable:$true] %s821_s7 }
  0x7a   : > { %s789_s14 = scalar_lea.hbm %s4825_s10, %s3034_s15 }
  0x7b   : > { %s790_s0 = sshll.u32 %s789_s14, 4  ;;  %s818_s21 = scalar_lea.hbm %s4826_s2, %s3034_s15  ;;  %s791_s0 = int_to_ptr.hbm [resolvable:$true] %s790_s0 }
  0x7c   : > { %3190 = dma.hbm_to_vmem [thread:$0]  (!%p4198_p10), %s791_s0, 2048, %s793_s17, %s4186_s25, %s4828_s29, %s4828_s29, %s4827_s1  }
  0x7d   : > { %s819_s30 = sshll.u32 %s818_s21, 4  ;;  %s820_s30 = int_to_ptr.hbm [resolvable:$true] %s819_s30 }
  0x7e   : > { %3193 = dma.hbm_to_vmem [thread:$0]  (!%p4198_p10), %s820_s30, 2048, %s822_s7, %s4206_s12, %s4829_s11, %s4829_s11, %s3907_s22  }
  0x7f   : > { %p4831_p1 = scmp.ne.s32.totalorder %s4830_s20, 0 }
  0x81   : > { %851 = sbr.rel (%p4831_p1) target bundleno = 2729 (0xaa9), region = 100 }
  0x86   : > { %s4832_s24 = sld [smem:[#allocation44_spill]] }
  0x87   : > { %s4833_s15 = sld [smem:[#allocation37_spill]] }
  0x88   : > { %s4834_s14 = sld [smem:[#allocation48_spill]] }
  0x8c   : > { %s853_s26 = sand.u32 1, %s4832_s24  }
  0x8d   : > { %s4294_s3 = sand.u32 1, %s4833_s15   ;;  %s4297_s19 = scalar_lea.sflag [#allocation4], %s853_s26 }
  0x8e   : > { %s2687_s25 = sshll.u32 %s4294_s3, 4  ;;  %p4835_p5 = scmp.ne.s32.totalorder %s4834_s14, 0 }
  0x8f   : > { %s4299_s17 = scalar_lea.vmem [#allocation3], %s2687_s25 }
  0x90   : > { %3803 = dma.done.wait (%p4835_p5), %s4297_s19, 256  }
  0x91   : > { %3805 = vsyncadd (%p4835_p5), %s4297_s19, 4294967040  ;;  %s4755_s12 = sshll.u32 %s4294_s3, 1  ;;  %s4308_s13 = scalar_lea.sflag [#allocation7], %s853_s26 }
  0x92   : > { %s4312_s7 = scalar_lea.vmem [#allocation6], %s4755_s12 }
  0x93   : > { %3807 = dma.done.wait (%p4835_p5), %s4308_s13, 32  }
  0x94   : > { %3809 = vsyncadd (%p4835_p5), %s4308_s13, 4294967264  ;;  %p4836_p8 = scmp.eq.s32.totalorder %s4832_s24, 0 }
  0x96   : > { %3811 = dma.done.wait (%p4836_p8), [#allocation7], 16   ;;  %p4837_p12 = pmov %p4836_p8 }
  0x97   : > { %p4838_p0 = pmov %p4836_p8 }
  0x98   : > { %3813 = vsyncadd (%p4837_p12), [#allocation7], 4294967280 }
  0x99   : > { %3815 = dma.done.wait (%p4838_p0), [#allocation10], 16   ;;  %p4839_p3 = pmov %p4838_p0 }
  0x9a   : > { %s4840_s22 = sld [smem:[#allocation34_spill]] }
  0x9b   : > { %3817 = vsyncadd (%p4839_p3), [#allocation10], 4294967280  ;;  %s4841_s0 = sld [smem:[#allocation45_spill]] }
  0xa0   : > { %s4329_s2 = sand.u32 1, %s4840_s22  }
  0xa1   : > { %s3120_s21 = smul.u32 192, %s4329_s2  ;;  %p4842_p4 = scmp.ne.s32.totalorder %s4841_s0, 0 }
  0xa3   : > { %s4332_s1 = scalar_lea.vmem [#allocation11], %s3120_s21 }
  0xa4   : > { %3819 = dma.done.wait (%p4842_p4), %s4297_s19, 3072  }
  0xa5   : > { %3821 = vsyncadd (%p4842_p4), %s4297_s19, 4294964224  ;;  %s3121_s29 = smul.u32 3, %s4329_s2 }
  0xa7   : > { %s4341_s30 = scalar_lea.vmem [#allocation12], %s3121_s29 }
  0xa8   : > { %3823 = dma.done.wait (%p4842_p4), %s4308_s13, 48  }
  0xa9   : > { %3825 = vsyncadd (%p4842_p4), %s4308_s13, 4294967248  ;;  %s2691_s9 = sshll.u32 %s4329_s2, 6 }
  0xaa   : > { %s4350_s11 = scalar_lea.vmem [#allocation13], %s2691_s9 }
  0xab   : > { %3827 = dma.done.wait (%p4842_p4), %s4297_s19, 1024  }
  0xac   : > { %3829 = vsyncadd (%p4842_p4), %s4297_s19, 4294966272 }
  0xad   : > { %3831 = dma.done.wait (%p4842_p4), %s4308_s13, 16  }
  0xae   : > { %3833 = vsyncadd (%p4842_p4), %s4308_s13, 4294967280  ;;  %s2692_s15 = sshll.u32 %s4329_s2, 7 }
  0xaf   : > { %s4366_s14 = scalar_lea.vmem [#allocation15], %s2692_s15 }
  0xb0   : > { %3835 = dma.done.wait (%p4842_p4), %s4297_s19, 2048  }
  0xb1   : > { %3837 = vsyncadd (%p4842_p4), %s4297_s19, 4294965248  ;;  %s4374_s26 = scalar_lea.vmem [#allocation16], %s2692_s15 }
  0xb2   : > { %4843 = sst [smem:[#allocation54_spill]] %s4374_s26 }
  0xb3   : > { %3839 = dma.done.wait (%p4842_p4), %s4308_s13, 2048  }
  0xb4   : > { %3841 = vsyncadd (%p4842_p4), %s4308_s13, 4294965248  ;;  %p4844_p7 = pmov %p4838_p0 }
  0xb5   : > { %p4845_p9 = pmov %p4838_p0 }
  0xb6   : > { %3843 = dma.done.wait (%p4844_p7), [#allocation10], 1024  }
  0xb7   : > { %3845 = vsyncadd (%p4845_p9), [#allocation10], 4294966272  ;;  %p4846_p13 = pmov %p4838_p0 }
  0xb8   : > { %p4847_p2 = pmov %p4838_p0 }
  0xb9   : > { %3847 = dma.done.wait (%p4846_p13), [#allocation19], 1024  }
  0xba   : > { %3849 = vsyncadd (%p4847_p2), [#allocation19], 4294966272  ;;  %s4848_s25 = sld [smem:[#allocation39_spill]]  ;;  %s4855_s29 = sshll.u32 %s4294_s3, 1 }
  0xbb   : > { %s4850_s24 = sld [smem:[#allocation64_spill]]  ;;  %s4422_s9 = scalar_lea.vmem [#allocation20], %s4855_s29 }
  0xbc   : > { %s4851_s6 = sld [smem:[#allocation68_spill]] }
  0xbd   : > { %s4852_s18 = sld [smem:[#allocation66_spill]] }
  0xbe   : > { %s4853_s27 = sld [smem:[#allocation69_spill]] }
  0xbf   : > { %s4854_s21 = sld [smem:[#allocation70_spill]] }
  0xc0   : > { %p1059_p10 = scmp.lt.s32.totalorder %s4848_s25, 1  ;;  %p2698_p1 = scmp.ne.s32.totalorder %s4848_s25, 0 }
  0xc2   : > { %s4392_s19 = scalar_select %p1059_p10, %s4848_s25, 1 }
  0xc3   : > { %1083 = sbr.rel (%p2698_p1) target bundleno = 476 (0x1dc), region = 152 }
  0xc4   : > { %s1064_s15 = scalar_lea.vmem %s4850_s24, %s4392_s19  ;;  %s2697_s20 = sshll.u32 %s4392_s19, 1 }
  0xc5   : > { %s1071_s8 = scalar_lea.vmem %s4851_s6, %s4392_s19  ;;  %s4410_s28 = scalar_lea.vmem %s4852_s18, %s2697_s20 }
  0xc6   : > { %s1074_s23 = scalar_lea.vmem %s4853_s27, %s4392_s19  ;;  %s1077_s26 = scalar_lea.vmem %s4854_s21, %s4392_s19 }
  0xc8   : > { %v1084_v0 = vld [vmem:[%s4299_s17] sm:$0xff]  ;;  %v1085_v1 = vld [vmem:[%s4299_s17 + $0x8] sm:$0xff]  ;;  %v3910_v2 = vmov 128.0  }
  0xc9   : > { %1088 = vadd.xlane.f32.xlu0 %v1084_v0  ;;  %3315 = vrcp.f32 %v3910_v2  ;;  %v3313_v31 = vld [vmem:[#allocation8] ss:$0 sm:$0xff]  ;;  %v3314_v34 = vld [vmem:[#allocation9] ss:$0 sm:$0xff] }
  0xcf   : > { %v3316_v3 = vpop.eup %3315 }
  0xd0   : > { %v1093_v4 = vmul.f32 128.0, %v3316_v3  ;;  %vm1097_vm0 = vweird.f32 %v3316_v3 }
  0xd1   : > { %1090 = vadd.xlane.f32.xlu0 %v1085_v1 }
  0xd2   : > { %v1094_v5 = vsub.f32 1.0, %v1093_v4 }
  0xd4   : > { %v1095_v6 = vmul.f32 %v3316_v3, %v1094_v5 }
  0xd6   : > { %v1096_v7 = vadd.f32 %v3316_v3, %v1095_v6 }
  0xd8   : > { %v1098_v8 = vsel %vm1097_vm0, %v3316_v3, %v1096_v7 }
 0x13c   : > { %v1089_v9 = vpop.xlane.xlu0 %1088 }
 0x13d   : > { %v1099_v10 = vmul.f32 %v1098_v8, %v1089_v9 }
 0x13f   : > { %v1101_v11 = vsub.f32 %v1084_v0, %v1099_v10 }
 0x141   : > { %v1103_v12 = vmul.f32 %v1101_v11, %v1101_v11 }
 0x143   : > { %1105 = vadd.xlane.f32.xlu1 %v1103_v12 }
 0x144   : > { %v1091_v13 = vpop.xlane.xlu0 %1090 }
 0x145   : > { %v1100_v14 = vmul.f32 %v1098_v8, %v1091_v13 }
 0x147   : > { %v1102_v15 = vsub.f32 %v1085_v1, %v1100_v14 }
 0x149   : > { %v1104_v16 = vmul.f32 %v1102_v15, %v1102_v15 }
 0x14b   : > { %1107 = vadd.xlane.f32.xlu1 %v1104_v16 }
 0x1b6   : > { %v1106_v17 = vpop.xlane.xlu1 %1105 }
 0x1b7   : > { %v1109_v18 = vmul.f32 %v1106_v17, %v1098_v8 }
 0x1b9   : > { %v1111_v19 = vadd.f32 1e-05, %v1109_v18 }
 0x1bb   : > { %3317 = vrsqrt.f32 %v1111_v19  ;;  %vm1119_vm2 = vweird.f32 %v1111_v19 }
 0x1be   : > { %v1108_v20 = vpop.xlane.xlu1 %1107 }
 0x1bf   : > { %v1110_v21 = vmul.f32 %v1108_v20, %v1098_v8 }
 0x1c1   : > { %v3318_v22 = vpop.eup %3317  ;;  %v1112_v23 = vadd.f32 1e-05, %v1110_v21 }
 0x1c2   : > { %v1114_v24 = vmul.f32 %v3318_v22, %v1111_v19  ;;  %vm1120_vm1 = vweird.f32 %v3318_v22 }
 0x1c3   : > { %3319 = vrsqrt.f32 %v1112_v23  ;;  %vm1121_vm3 = vmor %vm1119_vm2, %vm1120_vm1  ;;  %vm1129_vm5 = vweird.f32 %v1112_v23 }
 0x1c4   : > { %v1115_v25 = vmul.f32 %v3318_v22, %v1114_v24 }
 0x1c6   : > { %v1116_v26 = vmul.f32 0.5, %v1115_v25 }
 0x1c8   : > { %v1117_v27 = vsub.f32 1.5, %v1116_v26 }
 0x1c9   : > { %v3320_v28 = vpop.eup %3319 }
 0x1ca   : > { %v1118_v29 = vmul.f32 %v3318_v22, %v1117_v27  ;;  %v1124_v30 = vmul.f32 %v3320_v28, %v1112_v23  ;;  %vm1130_vm4 = vweird.f32 %v3320_v28 }
 0x1cb   : > { %vm1131_vm6 = vmor %vm1129_vm5, %vm1130_vm4 }
 0x1cc   : > { %v1122_v32 = vsel %vm1121_vm3, %v3318_v22, %v1118_v29  ;;  %v1125_v33 = vmul.f32 %v3320_v28, %v1124_v30 }
 0x1cd   : > { %v1133_v35 = vmul.f32 %v1122_v32, %v1101_v11 }
 0x1ce   : > { %v1126_v36 = vmul.f32 0.5, %v1125_v33 }
 0x1cf   : > { %v1138_v37 = vmul.f32 %v3313_v31, %v1133_v35 }
 0x1d0   : > { %v1127_v38 = vsub.f32 1.5, %v1126_v36 }
 0x1d1   : > { %v1143_v39 = vadd.f32 %v3314_v34, %v1138_v37 }
 0x1d2   : > { %v1128_v40 = vmul.f32 %v3320_v28, %v1127_v38 }
 0x1d3   : > { %1145 = vst [vmem:[#allocation2] sm:$0xff] %v1143_v39 }
 0x1d4   : > { %v1132_v41 = vsel %vm1131_vm6, %v3320_v28, %v1128_v40 }
 0x1d5   : > { %v1134_v42 = vmul.f32 %v1132_v41, %v1102_v15 }
 0x1d7   : > { %v1139_v43 = vmul.f32 %v3313_v31, %v1134_v42 }
 0x1d9   : > { %v1144_v44 = vadd.f32 %v3314_v34, %v1139_v43 }
 0x1db   : > { %1146 = vst [vmem:[#allocation2 + $0x8] sm:$0xff] %v1144_v44 }
 0x1dc PF: > { %v2785_v45 = vld [vmem:[%s4332_s1 + $0xa8] sm:$0xf]  ;;  %v3058_v46 = vld [vmem:[%s4332_s1 + $0xb0] sm:$0xf0]  ;;  %v3057_v47 = vld [vmem:[%s4332_s1 + $0xac] sm:$0xf] }
 0x1dd   : > { %v2786_v48 = vor.u32 %v3058_v46, %v2785_v45  ;;  %v2787_v49 = vld [vmem:[%s4332_s1 + $0xb4] sm:$0xf0]  ;;  %v2773_v50 = vld [vmem:[%s4332_s1 + $0x90] sm:$0xf]  ;;  %v3055_v51 = vld [vmem:[%s4332_s1 + $0x98] sm:$0xf0] }
 0x1de   : > { %v2790_v52 = vor.u32 %v3057_v47, %v2787_v49  ;;  %v3054_v53 = vld [vmem:[%s4332_s1 + $0x94] sm:$0xf]  ;;  %v2775_v54 = vld [vmem:[%s4332_s1 + $0x9c] sm:$0xf0]  ;;  %v2774_v55 = vor.u32 %v3055_v51, %v2773_v50  ;;  %v2761_v57 = vld [vmem:[%s4332_s1 + $0x78] sm:$0xf] }
 0x1df   : > { %1318 = vmatpush.bf16.msra.mxu0 %v2786_v48  ;;  %v2778_v56 = vor.u32 %v3054_v53, %v2775_v54  ;;  %v3052_v58 = vld [vmem:[%s4332_s1 + $0x80] sm:$0xf0]  ;;  %v3051_v59 = vld [vmem:[%s4332_s1 + $0x7c] sm:$0xf]  ;;  %v2763_v60 = vld [vmem:[%s4332_s1 + $0x84] sm:$0xf0] }
 0x1e0   : > { %1332 = vmatpush.bf16.msra.mxu1 %v2790_v52  ;;  %v2762_v61 = vor.u32 %v3052_v58, %v2761_v57  ;;  %v2766_v62 = vor.u32 %v3051_v59, %v2763_v60  ;;  %v2749_v63 = vld [vmem:[%s4332_s1 + $0x60] sm:$0xf]  ;;  %v3049_v0 = vld [vmem:[%s4332_s1 + $0x68] sm:$0xf0]  ;;  %v3048_v1 = vld [vmem:[%s4332_s1 + $0x64] sm:$0xf] }
 0x1e1   : > { %v2751_v2 = vld [vmem:[%s4332_s1 + $0x6c] sm:$0xf0]  ;;  %v2737_v3 = vld [vmem:[%s4332_s1 + $0x48] sm:$0xf]  ;;  %v2750_v4 = vor.u32 %v3049_v0, %v2749_v63  ;;  %v3046_v5 = vld [vmem:[%s4332_s1 + $0x50] sm:$0xf0] }
 0x1e2   : > { %v3045_v6 = vld [vmem:[%s4332_s1 + $0x4c] sm:$0xf]  ;;  %v2754_v7 = vor.u32 %v3048_v1, %v2751_v2  ;;  %v2739_v8 = vld [vmem:[%s4332_s1 + $0x54] sm:$0xf0]  ;;  %v2738_v9 = vor.u32 %v3046_v5, %v2737_v3  ;;  %v2725_v11 = vld [vmem:[%s4332_s1 + $0x30] sm:$0xf] }
 0x1e3   : > { %1319 = vmatpush.bf16.msra.mxu0 %v2774_v55  ;;  %v2742_v10 = vor.u32 %v3045_v6, %v2739_v8  ;;  %v3043_v12 = vld [vmem:[%s4332_s1 + $0x38] sm:$0xf0]  ;;  %v3042_v13 = vld [vmem:[%s4332_s1 + $0x34] sm:$0xf]  ;;  %v2727_v14 = vld [vmem:[%s4332_s1 + $0x3c] sm:$0xf0] }
 0x1e4   : > { %1333 = vmatpush.bf16.msra.mxu1 %v2778_v56  ;;  %v2726_v15 = vor.u32 %v3043_v12, %v2725_v11  ;;  %v2730_v16 = vor.u32 %v3042_v13, %v2727_v14  ;;  %v2713_v17 = vld [vmem:[%s4332_s1 + $0x18] sm:$0xf]  ;;  %v3040_v18 = vld [vmem:[%s4332_s1 + $0x20] sm:$0xf0]  ;;  %v3039_v19 = vld [vmem:[%s4332_s1 + $0x1c] sm:$0xf] }
 0x1e5   : > { %v2715_v20 = vld [vmem:[%s4332_s1 + $0x24] sm:$0xf0]  ;;  %v2714_v21 = vor.u32 %v3040_v18, %v2713_v17  ;;  %v2701_v23 = vld [vmem:[%s4332_s1] sm:$0xf]  ;;  %v3037_v24 = vld [vmem:[%s4332_s1 + $0x8] sm:$0xf0] }
 0x1e6   : > { %v2718_v22 = vor.u32 %v3039_v19, %v2715_v20  ;;  %v3036_v25 = vld [vmem:[%s4332_s1 + $0x4] sm:$0xf]  ;;  %v2703_v26 = vld [vmem:[%s4332_s1 + $0xc] sm:$0xf0]  ;;  %v2702_v27 = vor.u32 %v3037_v24, %v2701_v23  ;;  %v4459_v28 = vld [vmem:[#allocation2] sm:$0xff]  ;;  %vm1374_vm7 = vcmask 523264  }
 0x1e7   : > { %1320 = vmatpush.bf16.msra.mxu0 %v2762_v61  ;;  %v4461_v29 = vld [vmem:[#allocation2 + $0x8] sm:$0xff]  ;;  %v2706_v30 = vor.u32 %v3036_v25, %v2703_v26  ;;  %v4470_v32 = vld [vmem:[%s4341_s30] sm:$0x7]  ;;  %v3059_v36 = vld [vmem:[%s4332_s1 + $0xb8] sm:$0xf0]  ;;  %s3911_s5 = smov 64  }
 0x1e8   : > { %1334 = vmatpush.bf16.msra.mxu1 %v2766_v62  ;;  %v4465_v31 = vpack.c.bf16 %v4461_v29, %v4459_v28  ;;  %v1184_v33 = vperm.slane %v4470_v32, 0  ;;  %v1185_v34 = vperm.slane %v4470_v32, 1  ;;  %v2793_v35 = vld [vmem:[%s4332_s1 + $0xb0] sm:$0xf]  ;;  %v2781_v37 = vld [vmem:[%s4332_s1 + $0x98] sm:$0xf] }
 0x1e9   : > { %v2794_v38 = vor.u32 %v3059_v36, %v2793_v35  ;;  %v3056_v39 = vld [vmem:[%s4332_s1 + $0xa0] sm:$0xf0]  ;;  %v2769_v45 = vld [vmem:[%s4332_s1 + $0x80] sm:$0xf]  ;;  %v3053_v46 = vld [vmem:[%s4332_s1 + $0x88] sm:$0xf0] }
 0x1ea   : > { %v2782_v42 = vor.u32 %v3056_v39, %v2781_v37  ;;  %v2770_v48 = vor.u32 %v3053_v46, %v2769_v45  ;;  %v2757_v52 = vld [vmem:[%s4332_s1 + $0x68] sm:$0xf]  ;;  %v3050_v53 = vld [vmem:[%s4332_s1 + $0x70] sm:$0xf0]  ;;  %v2745_v60 = vld [vmem:[%s4332_s1 + $0x50] sm:$0xf] }
 0x1eb   : > { %1321 = vmatpush.bf16.msra.mxu0 %v2750_v4  ;;  %1346 = vmatpush.bf16.msra.mxu2 %v2794_v38  ;;  %v2758_v57 = vor.u32 %v3050_v53, %v2757_v52  ;;  %v3047_v61 = vld [vmem:[%s4332_s1 + $0x58] sm:$0xf0]  ;;  %v2733_v4 = vld [vmem:[%s4332_s1 + $0x38] sm:$0xf]  ;;  %v3044_v5 = vld [vmem:[%s4332_s1 + $0x40] sm:$0xf0] }
 0x1ec   : > { %1335 = vmatpush.bf16.msra.mxu1 %v2754_v7  ;;  %v2746_v0 = vor.u32 %v3047_v61, %v2745_v60  ;;  %v2734_v8 = vor.u32 %v3044_v5, %v2733_v4  ;;  %v2709_v13 = vld [vmem:[%s4332_s1 + $0x8] sm:$0xf]  ;;  %v3038_v14 = vld [vmem:[%s4332_s1 + $0x10] sm:$0xf0]  ;;  %vm1413_vm8 = vcmask 64512   ;;  %vm1441_vm9 = vcmask 1043456  }
 0x1ed   : > { %s4856_s16 = sld [smem:[#allocation62_spill]]  ;;  %s4859_s4 = scalar_lea.vmem [#allocation14], %s4329_s2 }
 0x1ee   : > { %s4858_s27 = sld [smem:[#allocation54_spill]] }
 0x1ef   : > { %1322 = vmatpush.bf16.msra.mxu0 %v2738_v9  ;;  %1347 = vmatpush.bf16.msra.mxu2 %v2782_v42  ;;  %v2721_v9 = vld [vmem:[%s4332_s1 + $0x20] sm:$0xf] }
 0x1f0   : > { %1336 = vmatpush.bf16.msra.mxu1 %v2742_v10  ;;  %v3041_v10 = vld [vmem:[%s4332_s1 + $0x28] sm:$0xf0] }
 0x1f1   : > { %v2722_v12 = vor.u32 %v3041_v10, %v2721_v9 }
 0x1f3   : > { %1323 = vmatpush.bf16.msra.mxu0 %v2726_v15  ;;  %1348 = vmatpush.bf16.msra.mxu2 %v2770_v48  ;;  %s4857_s18 = scalar_lea.vmem %s4856_s16, %s4392_s19 }
 0x1f4   : > { %1337 = vmatpush.bf16.msra.mxu1 %v2730_v16  ;;  %v2710_v16 = vor.u32 %v3038_v14, %v2709_v13 }
 0x1f7   : > { %1324 = vmatpush.bf16.msra.mxu0 %v2714_v21  ;;  %1349 = vmatpush.bf16.msra.mxu2 %v2758_v57 }
 0x1f8   : > { %1338 = vmatpush.bf16.msra.mxu1 %v2718_v22  ;;  %v3326_v22 = vld [vmem:[%s4312_s7] ss:$0 sm:$0xff] }
 0x1fb   : > { %1325 = vmatpush.bf16.msra.mxu0 %v2702_v27  ;;  %1350 = vmatpush.bf16.msra.mxu2 %v2746_v0 }
 0x1fc   : > { %1339 = vmatpush.bf16.msra.mxu1 %v2706_v30  ;;  %v3327_v30 = vld [vmem:[%s4312_s7 + $0x1] ss:$0 sm:$0xff] }
 0x1fe   : > { %1326 = vmatmul.bf16.vlgmr.msra.gmra.mxu0 %v4465_v31 }
 0x1ff   : > { %1340 = vmatmul.bf16.vlgmr.msra.gmra.mxu1 %v4465_v31  ;;  %1351 = vmatpush.bf16.msra.mxu2 %v2734_v8 }
 0x203   : > { %1352 = vmatpush.bf16.msra.mxu2 %v2722_v12 }
 0x207   : > { %1353 = vmatpush.bf16.msra.mxu2 %v2710_v16 }
 0x20a   : > { %1354 = vmatmul.bf16.vlgmr.msra.gmra.mxu2 %v4465_v31  ;;  %v1186_v31 = vperm.slane %v4470_v32, 2 }
 0x27b   : > { %v1327_v40 = vpop.f32.mrf.mxu0 }
 0x27c   : > { %v1341_v41 = vpop.f32.mrf.mxu1  ;;  %v1328_v43 = vadd.f32 %v1327_v40, %v1184_v33 }
 0x27d   : > { %v1342_v44 = vadd.f32 %v1341_v41, %v1185_v34 }
 0x27e   : > { %v1362_v49 = vpack.c.bf16 %v1328_v43, %v1328_v43 }
 0x27f   : > { %v1364_v47 = vpack.c.bf16 %v1342_v44, %v1342_v44 }
 0x280   : > { %v1478_v58 = vunpack.c.l.b16 %v1362_v49 }
 0x281   : > { %v1379_v50 = vsel %vm1374_vm7, %v1364_v47, 0  ;;  %v1483_v51 = vunpack.c.l.b16 %v1364_v47 }
 0x282   : > { %1388 = vmatpush.bf16.xpose.msra.mxu3 %v1379_v50  ;;  %v1479_v1 = vpack.c.b16 %v1478_v58, %v1478_v58 }
 0x283   : > { %v1484_v54 = vpack.c.b16 %v1483_v51, %v1483_v51  ;;  %v1329_v55 = vpop.f32.mrf.mxu0 }
 0x284   : > { %v1343_v56 = vpop.f32.mrf.mxu1  ;;  %v1330_v62 = vadd.f32 %v1329_v55, %v1184_v33 }
 0x285   : > { %v1344_v59 = vadd.f32 %v1343_v56, %v1185_v34  ;;  %1485 = vrot.lane.b32.xlu0 %v1484_v54, %s3911_s5 }
 0x286   : > { %v1363_v6 = vpack.c.bf16 %v1330_v62, %v1330_v62 }
 0x287   : > { %v1365_v63 = vpack.c.bf16 %v1344_v59, %v1344_v59 }
 0x288   : > { %v1507_v11 = vunpack.c.l.b16 %v1363_v6 }
 0x289   : > { %2795 = vmatmul.msk.bf16.vlgmr.msra.gmra.mxu3 %vm1374_vm7, %v1362_v49  ;;  %v1398_v2 = vsel %vm1374_vm7, %v1365_v63, 0  ;;  %v1512_v3 = vunpack.c.l.b16 %v1365_v63 }
 0x28a   : > { %1407 = vmatpush.bf16.xpose.msrb.mxu3 %v1398_v2  ;;  %v1508_v15 = vpack.c.b16 %v1507_v11, %v1507_v11 }
 0x28b   : > { %v1513_v7 = vpack.c.b16 %v1512_v3, %v1512_v3 }
 0x28d   : > { %1514 = vrot.lane.b32.xlu1 %v1513_v7, %s3911_s5  ;;  %1480 = vrot.lane.b32.xlu0 %v1479_v1, %s3911_s5  ;;  %v1355_v35 = vpop.f32.mrf.mxu2 }
 0x28e   : > { %v1356_v37 = vadd.f32 %v1355_v35, %v1186_v31 }
 0x290   : > { %v4508_v38 = vpack.c.bf16 %v1356_v37, %v1356_v37 }
 0x292   : > { %v1443_v39 = vsel %vm1441_vm9, %v4508_v38, 0 }
 0x293   : > { %1452 = vmatpush.bf16.msra.mxu3 %v1443_v39  ;;  %v3067_v39 = vld [vmem:[%s4350_s11 + $0x38] sm:$0xff] }
 0x294   : > { %1686 = vmatpush.bf16.msrb.mxu1 %v3067_v39 }
 0x295   : > { %1509 = vrot.lane.b32.xlu1 %v1508_v15, %s3911_s5  ;;  %v1357_v41 = vpop.f32.mrf.mxu2 }
 0x296   : > { %v1358_v42 = vadd.f32 %v1357_v41, %v1186_v31  ;;  %v3065_v41 = vld [vmem:[%s4350_s11 + $0x28] sm:$0xff] }
 0x298   : > { %v1367_v43 = vpack.c.bf16 %v1358_v42, %v1358_v42  ;;  %v3064_v42 = vld [vmem:[%s4350_s11 + $0x20] sm:$0xff] }
 0x299   : > { %2796 = vmatmul.msk.bf16.vlgmr.msrb.gmra.mxu3 %vm1374_vm7, %v1363_v6 }
 0x29a   : > { %v1462_v32 = vsel %vm1441_vm9, %v1367_v43, 0  ;;  %v1584_v57 = vunpack.c.l.b16 %v1367_v43  ;;  %v3063_v43 = vld [vmem:[%s4350_s11 + $0x18] sm:$0xff] }
 0x29b   : > { %1471 = vmatpush.bf16.msrb.mxu0 %v1462_v32 }
 0x29c   : > { %v1585_v60 = vpack.c.b16 %v1584_v57, %v1584_v57  ;;  %v3328_v57 = vld [vmem:[%s4857_s18] ss:$0 sm:$0xff] }
 0x2f7   : > { %v1486_v17 = vpop.permute.xlu0 %1485 }
 0x2f8   : > { %v1491_v18 = vsel %vm1374_vm7, %v1486_v17, 0 }
 0x2f9   : > { %1500 = vmatpush.bf16.xpose.msrb.mxu2 %v1491_v18 }
 0x2ff   : > { %v1515_v19 = vpop.permute.xlu1 %1514  ;;  %v1481_v20 = vpop.permute.xlu0 %1480 }
 0x300   : > { %v1520_v21 = vsel %vm1374_vm7, %v1515_v19, 0  ;;  %2799 = vmatmul.msk.bf16.vlgmr.msrb.gmra.mxu2 %vm1374_vm7, %v1481_v20  ;;  %v1560_v20 = vunpack.c.l.b16 %v4508_v38 }
 0x301   : > { %1529 = vmatpush.bf16.xpose.msra.mxu2 %v1520_v21 }
 0x302   : > { %v1561_v21 = vpack.c.b16 %v1560_v20, %v1560_v20  ;;  %v3081_v20 = vld [vmem:[%s4366_s14 + $0x64] sm:$0xf0] }
 0x307   : > { %v1510_v25 = vpop.permute.xlu1 %1509 }
 0x30c   : > { %v1390_v23 = vpop.f32.mrf.mxu3 }
 0x30d   : > { %v1391_v24 = vadd.f32 %v3326_v22, %v1390_v23 }
 0x30f   : > { %v1414_v26 = vsel %vm1413_vm8, %v1391_v24, -inf }
 0x310   : > { %2800 = vmatmul.msk.bf16.vlgmr.msra.gmra.mxu2 %vm1374_vm7, %v1510_v25  ;;  %1415 = vmax.xlane.f32.xlu2 %v1414_v26 }
 0x314   : > { %v1392_v27 = vpop.f32.mrf.mxu3 }
 0x31c   : > { %v1409_v33 = vpop.f32.mrf.mxu3 }
 0x31d   : > { %v1410_v34 = vadd.f32 %v3327_v30, %v1409_v33 }
 0x31f   : > { %v1417_v36 = vsel %vm1413_vm8, %v1410_v34, -inf }
 0x320   : > { %1418 = vmax.xlane.f32.xlu2 %v1417_v36 }
 0x324   : > { %v1411_v40 = vpop.f32.mrf.mxu3 }
 0x325   : > { %v3066_v40 = vld [vmem:[%s4350_s11 + $0x30] sm:$0xff] }
 0x326   : > { %1687 = vmatpush.bf16.msrb.mxu1 %v3066_v40  ;;  %v2861_v40 = vld [vmem:[%s4366_s14 + $0x30] sm:$0xf] }
 0x32a   : > { %1688 = vmatpush.bf16.msrb.mxu1 %v3065_v41  ;;  %v3075_v41 = vld [vmem:[%s4366_s14 + $0x34] sm:$0xf0] }
 0x32e   : > { %1689 = vmatpush.bf16.msrb.mxu1 %v3064_v42  ;;  %v3074_v42 = vld [vmem:[%s4366_s14 + $0x34] sm:$0xf] }
 0x332   : > { %1690 = vmatpush.bf16.msrb.mxu1 %v3063_v43  ;;  %v2862_v43 = vor.u32 %v3075_v41, %v2861_v40  ;;  %v3086_v40 = vld [vmem:[%s4858_s27 + $0x10] sm:$0xff] }
 0x333   : > { %v3094_v41 = vld [vmem:[%s4858_s27 + $0x50] sm:$0xff] }
 0x383   : > { %v1502_v44 = vpop.f32.mrf.mxu2  ;;  %v1416_v45 = vpop.xlane.xlu2 %1415 }
 0x384   : > { %v1503_v46 = vadd.f32 %v3326_v22, %v1502_v44  ;;  %v1420_v47 = vsub.f32 %v1391_v24, %v1416_v45  ;;  %v3062_v44 = vld [vmem:[%s4350_s11 + $0x10] sm:$0xff]  ;;  %v3061_v45 = vld [vmem:[%s4350_s11 + $0x8] sm:$0xff] }
 0x385   : > { %1691 = vmatpush.bf16.msrb.mxu1 %v3062_v44 }
 0x386   : > { %v1422_v48 = vmul.f32 1.442695, %v1420_v47  ;;  %v1535_v49 = vsel %vm1413_vm8, %v1503_v46, -inf }
 0x387   : > { %1536 = vmax.xlane.f32.xlu0 %v1535_v49 }
 0x388   : > { %3334 = vpow2.f32 %v1422_v48 }
 0x389   : > { %1692 = vmatpush.bf16.msrb.mxu1 %v3061_v45  ;;  %v2853_v45 = vld [vmem:[%s4366_s14 + $0x20] sm:$0xf] }
 0x38b   : > { %v1504_v50 = vpop.f32.mrf.mxu2 }
 0x38c   : > { %v3060_v50 = vld [vmem:[%s4350_s11] sm:$0xff] }
 0x38d   : > { %1693 = vmatpush.bf16.msrb.mxu1 %v3060_v50 }
 0x38e   : > { %v3335_v51 = vpop.eup %3334 }
 0x38f   : > { %v1426_v52 = vsel %vm1413_vm8, %v3335_v51, 0.0 }
 0x390   : > { %1427 = vadd.xlane.f32.xlu2 %v1426_v52 }
 0x393   : > { %v1531_v53 = vpop.f32.mrf.mxu2  ;;  %v1419_v54 = vpop.xlane.xlu2 %1418 }
 0x394   : > { %v1532_v55 = vadd.f32 %v3327_v30, %v1531_v53  ;;  %v1421_v56 = vsub.f32 %v1410_v34, %v1419_v54 }
 0x396   : > { %v1424_v58 = vmul.f32 1.442695, %v1421_v56  ;;  %v1538_v59 = vsel %vm1413_vm8, %v1532_v55, -inf }
 0x397   : > { %1539 = vmax.xlane.f32.xlu1 %v1538_v59 }
 0x398   : > { %3336 = vpow2.f32 %v1424_v58 }
 0x39b   : > { %v1533_v61 = vpop.f32.mrf.mxu2  ;;  %1586 = vrot.lane.b32.xlu0 %v1585_v60, %s3911_s5 }
 0x39e   : > { %v3337_v62 = vpop.eup %3336 }
 0x39f   : > { %v1429_v63 = vsel %vm1413_vm8, %v3337_v62, 0.0 }
 0x3a0   : > { %1430 = vadd.xlane.f32.xlu2 %v1429_v63 }
 0x3fa   : > { %v1537_v0 = vpop.xlane.xlu0 %1536 }
 0x3fb   : > { %v1541_v1 = vsub.f32 %v1503_v46, %v1537_v0  ;;  %v3912_v0 = vmov 128.0  }
 0x3fd   : > { %v1543_v2 = vmul.f32 1.442695, %v1541_v1 }
 0x3ff   : > { %3338 = vpow2.f32 %v1543_v2 }
 0x403   : > { %v1428_v3 = vpop.xlane.xlu2 %1427 }
 0x404   : > { %3340 = vrcp.f32 %v1428_v3 }
 0x405   : > { %v3339_v4 = vpop.eup %3338 }
 0x406   : > { %v1547_v5 = vsel %vm1413_vm8, %v3339_v4, 0.0 }
 0x407   : > { %1548 = vadd.xlane.f32.xlu2 %v1547_v5 }
 0x40a   : > { %v3341_v6 = vpop.eup %3340  ;;  %v1540_v7 = vpop.xlane.xlu1 %1539 }
 0x40b   : > { %v1434_v8 = vmul.f32 %v3341_v6, %v3335_v51  ;;  %v1542_v9 = vsub.f32 %v1532_v55, %v1540_v7 }
 0x40d   : > { %v1436_v10 = vpack.c.bf16 %v1434_v8, %v1434_v8  ;;  %v1545_v11 = vmul.f32 1.442695, %v1542_v9  ;;  %v1587_v12 = vpop.permute.xlu0 %1586 }
 0x40e   : > { %v1592_v13 = vsel %vm1441_vm9, %v1587_v12, 0 }
 0x40f   : > { %3342 = vpow2.f32 %v1545_v11  ;;  %2797 = vmatmul.msk.bf16.vlgmr.msra.gmra.mxu3 %vm1413_vm8, %v1436_v10  ;;  %1601 = vmatpush.bf16.msra.mxu0 %v1592_v13  ;;  %v2893_v13 = vld [vmem:[%s4366_s14 + $0x70] sm:$0xf] }
 0x413   : > { %v1431_v14 = vpop.xlane.xlu2 %1430 }
 0x414   : > { %3344 = vrcp.f32 %v1431_v14  ;;  %v3083_v14 = vld [vmem:[%s4366_s14 + $0x74] sm:$0xf0] }
 0x415   : > { %v3343_v15 = vpop.eup %3342 }
 0x416   : > { %v1550_v16 = vsel %vm1413_vm8, %v3343_v15, 0.0 }
 0x417   : > { %1551 = vadd.xlane.f32.xlu2 %v1550_v16  ;;  %v2894_v16 = vor.u32 %v3083_v14, %v2893_v13 }
 0x419   : > { %1864 = vmatpush.bf16.msrb.mxu2 %v2894_v16 }
 0x41a   : > { %v3345_v17 = vpop.eup %3344 }
 0x41b   : > { %v1435_v18 = vmul.f32 %v3345_v17, %v3337_v62  ;;  %v2895_v17 = vld [vmem:[%s4366_s14 + $0x78] sm:$0xf0] }
 0x41d   : > { %v1437_v19 = vpack.c.bf16 %v1435_v18, %v1435_v18 }
 0x41f   : > { %2798 = vmatmul.msk.bf16.vlgmr.msrb.gmra.mxu0 %vm1413_vm8, %v1437_v19  ;;  %v2885_v19 = vld [vmem:[%s4366_s14 + $0x60] sm:$0xf] }
 0x42f   : > { %1562 = vrot.lane.b32.xlu2 %v1561_v21, %s3911_s5  ;;  %v3080_v21 = vld [vmem:[%s4366_s14 + $0x64] sm:$0xf] }
 0x47a   : > { %v1549_v22 = vpop.xlane.xlu2 %1548 }
 0x47b   : > { %3346 = vrcp.f32 %v1549_v22  ;;  %v2886_v22 = vor.u32 %v3081_v20, %v2885_v19  ;;  %v3329_v19 = vld [vmem:[%s4859_s4] ss:$0 sm:$0xff] }
 0x47d   : > { %1865 = vmatpush.bf16.msrb.mxu2 %v2886_v22 }
 0x481   : > { %v3347_v24 = vpop.eup %3346 }
 0x482   : > { %v1555_v26 = vmul.f32 %v3347_v24, %v3339_v4 }
 0x484   : > { %v1557_v35 = vpack.c.bf16 %v1555_v26, %v1555_v26  ;;  %v3079_v26 = vld [vmem:[%s4366_s14 + $0x54] sm:$0xf0] }
 0x48a   : > { %v1552_v23 = vpop.xlane.xlu2 %1551 }
 0x48b   : > { %3348 = vrcp.f32 %v1552_v23  ;;  %v2887_v23 = vld [vmem:[%s4366_s14 + $0x68] sm:$0xf0] }
 0x48c   : > { %3350 = vrcp.f32 %v3912_v0  ;;  %v2890_v24 = vor.u32 %v3080_v21, %v2887_v23 }
 0x491   : > { %v3349_v25 = vpop.eup %3348 }
 0x492   : > { %v1556_v27 = vmul.f32 %v3349_v25, %v3343_v15  ;;  %v1454_v30 = vpop.f32.mrf.mxu3  ;;  %v1563_v31 = vpop.permute.xlu2 %1562  ;;  %v3082_v15 = vld [vmem:[%s4366_s14 + $0x74] sm:$0xf]  ;;  %v2877_v25 = vld [vmem:[%s4366_s14 + $0x50] sm:$0xf] }
 0x493   : > { %v1568_v33 = vsel %vm1441_vm9, %v1563_v31, 0  ;;  %v3351_v1 = vpop.eup %3350  ;;  %v2898_v18 = vor.u32 %v3082_v15, %v2895_v17  ;;  %v2879_v31 = vld [vmem:[%s4366_s14 + $0x58] sm:$0xf0] }
 0x494   : > { %v1558_v34 = vpack.c.bf16 %v1556_v27, %v1556_v27  ;;  %1577 = vmatpush.bf16.msrb.mxu3 %v1568_v33  ;;  %v1709_v2 = vmul.f32 128.0, %v3351_v1  ;;  %vm1713_vm10 = vweird.f32 %v3351_v1  ;;  %v3078_v27 = vld [vmem:[%s4366_s14 + $0x54] sm:$0xf] }
 0x495   : > { %v2882_v33 = vor.u32 %v3078_v27, %v2879_v31  ;;  %v3090_v31 = vld [vmem:[%s4858_s27 + $0x30] sm:$0xff] }
 0x496   : > { %2802 = vmatmul.msk.bf16.vlgmr.msra.gmra.mxu0 %vm1413_vm8, %v1558_v34  ;;  %v1710_v3 = vsub.f32 1.0, %v1709_v2  ;;  %v2869_v34 = vld [vmem:[%s4366_s14 + $0x40] sm:$0xf] }
 0x497   : > { %2801 = vmatmul.msk.bf16.vlgmr.msrb.gmra.mxu3 %vm1413_vm8, %v1557_v35  ;;  %v3077_v35 = vld [vmem:[%s4366_s14 + $0x44] sm:$0xf0] }
 0x498   : > { %v1711_v4 = vmul.f32 %v3351_v1, %v1710_v3  ;;  %1878 = vmatpush.bf16.msra.mxu3 %v2898_v18 }
 0x49a   : > { %v1456_v36 = vpop.f32.mrf.mxu3  ;;  %v1712_v5 = vadd.f32 %v3351_v1, %v1711_v4 }
 0x49b   : > { %v3076_v36 = vld [vmem:[%s4366_s14 + $0x44] sm:$0xf] }
 0x49c   : > { %v1473_v37 = vpop.f32.mrf.mxu0  ;;  %v4546_v6 = vsel %vm1713_vm10, %v3351_v1, %v1712_v5  ;;  %1879 = vmatpush.bf16.msra.mxu3 %v2890_v24  ;;  %v3330_v24 = vld [vmem:[%s1064_s15] ss:$0 sm:$0xff] }
 0x4a0   : > { %1880 = vmatpush.bf16.msra.mxu3 %v2882_v33  ;;  %v3098_v33 = vld [vmem:[%s4858_s27 + $0x70] sm:$0xff] }
 0x4a4   : > { %v1475_v38 = vpop.f32.mrf.mxu0 }
 0x4a5   : > { %v2871_v38 = vld [vmem:[%s4366_s14 + $0x48] sm:$0xf0] }
 0x4a6   : > { %v2874_v39 = vor.u32 %v3076_v36, %v2871_v38  ;;  %v3088_v36 = vld [vmem:[%s4858_s27 + $0x20] sm:$0xff]  ;;  %v3087_v38 = vld [vmem:[%s4858_s27 + $0x18] sm:$0xff] }
 0x4a8   : > { %1881 = vmatpush.bf16.msra.mxu3 %v2874_v39  ;;  %v3095_v39 = vld [vmem:[%s4858_s27 + $0x58] sm:$0xff] }
 0x513   : > { %v1603_v32 = vpop.f32.mrf.mxu0 }
 0x51a   : > { %v1579_v46 = vpop.f32.mrf.mxu3 }
 0x51b   : > { %v3321_v47 = vpack.i.bf16 %v1603_v32, %v1579_v46  ;;  %v1605_v48 = vpop.f32.mrf.mxu0  ;;  %v2863_v32 = vld [vmem:[%s4366_s14 + $0x38] sm:$0xf0]  ;;  %v3073_v46 = vld [vmem:[%s4366_s14 + $0x24] sm:$0xf0] }
 0x51c   : > { %v2866_v44 = vor.u32 %v3074_v42, %v2863_v32  ;;  %v2854_v48 = vor.u32 %v3073_v46, %v2853_v45  ;;  %v1778_v42 = vld [vmem:[%s4410_s28] sm:$0x3]  ;;  %v3093_v32 = vld [vmem:[%s4858_s27 + $0x48] sm:$0xff] }
 0x51d   : > { %3322 = vrot.lane.b32.xlu1 %v3321_v47, %s3911_s5  ;;  %v3072_v47 = vld [vmem:[%s4366_s14 + $0x24] sm:$0xf]  ;;  %v1781_v45 = vperm.slane %v1778_v42, 1 }
 0x51e   : > { %1882 = vmatpush.bf16.msra.mxu3 %v2866_v44  ;;  %v1780_v44 = vperm.slane %v1778_v42, 0 }
 0x522   : > { %v1581_v49 = vpop.f32.mrf.mxu3 }
 0x523   : > { %v2855_v49 = vld [vmem:[%s4366_s14 + $0x28] sm:$0xf0] }
 0x524   : > { %v2858_v50 = vor.u32 %v3072_v47, %v2855_v49  ;;  %v3092_v49 = vld [vmem:[%s4858_s27 + $0x40] sm:$0xff] }
 0x526   : > { %1883 = vmatpush.bf16.msra.mxu3 %v2858_v50 }
 0x58f   : > { %v3323_v51 = vpop.permute.xlu1 %3322 }
 0x590   : > { %v3325_v52 = vunpack.i.h.bf16 %v3323_v51  ;;  %v3324_v53 = vunpack.i.l.bf16 %v3323_v51  ;;  %v2845_v51 = vld [vmem:[%s4366_s14 + $0x10] sm:$0xf] }
 0x592   : > { %v1615_v54 = vsel %vm1374_vm7, %v1454_v30, %v3324_v53  ;;  %v1616_v55 = vsel %vm1374_vm7, %v1473_v37, %v3325_v52  ;;  %v2878_v30 = vor.u32 %v3079_v26, %v2877_v25  ;;  %v2870_v37 = vor.u32 %v3077_v35, %v2869_v34  ;;  %v3071_v52 = vld [vmem:[%s4366_s14 + $0x14] sm:$0xf0]  ;;  %v3070_v53 = vld [vmem:[%s4366_s14 + $0x14] sm:$0xf]  ;;  %v3089_v34 = vld [vmem:[%s4858_s27 + $0x28] sm:$0xff] }
 0x593   : > { %v1617_v56 = vpack.c.bf16 %v1616_v55, %v1615_v54  ;;  %v2846_v54 = vor.u32 %v3071_v52, %v2845_v51  ;;  %v2847_v55 = vld [vmem:[%s4366_s14 + $0x18] sm:$0xf0]  ;;  %v3097_v35 = vld [vmem:[%s4858_s27 + $0x68] sm:$0xff] }
 0x594   : > { %1866 = vmatpush.bf16.msrb.mxu2 %v2878_v30  ;;  %v3099_v30 = vld [vmem:[%s4858_s27 + $0x78] sm:$0xff] }
 0x595   : > { %1694 = vmatmul.bf16.vlgmr.msrb.gmra.mxu1 %v1617_v56  ;;  %v2850_v56 = vor.u32 %v3070_v53, %v2847_v55 }
 0x596   : > { %2076 = vmatpush.bf16.msra.mxu1 %v3099_v30 }
 0x597   : > { %1884 = vmatpush.bf16.msra.mxu3 %v2850_v56 }
 0x598   : > { %1867 = vmatpush.bf16.msrb.mxu2 %v2870_v37  ;;  %v3096_v37 = vld [vmem:[%s4858_s27 + $0x60] sm:$0xff] }
 0x59a   : > { %2077 = vmatpush.bf16.msra.mxu1 %v3098_v33 }
 0x59c   : > { %1868 = vmatpush.bf16.msrb.mxu2 %v2862_v43  ;;  %v3085_v43 = vld [vmem:[%s4858_s27 + $0x8] sm:$0xff] }
 0x59e   : > { %2078 = vmatpush.bf16.msra.mxu1 %v3097_v35 }
 0x5a0   : > { %1869 = vmatpush.bf16.msrb.mxu2 %v2854_v48  ;;  %v3084_v48 = vld [vmem:[%s4858_s27] sm:$0xff] }
 0x5a2   : > { %2079 = vmatpush.bf16.msra.mxu1 %v3096_v37 }
 0x5a4   : > { %1870 = vmatpush.bf16.msrb.mxu2 %v2846_v54 }
 0x5a6   : > { %2080 = vmatpush.bf16.msra.mxu1 %v3095_v39 }
 0x5aa   : > { %2081 = vmatpush.bf16.msra.mxu1 %v3094_v41 }
 0x5ae   : > { %2082 = vmatpush.bf16.msra.mxu1 %v3093_v32 }
 0x5b2   : > { %2083 = vmatpush.bf16.msra.mxu1 %v3092_v49 }
 0x612   : > { %v1695_v58 = vpop.f32.mrf.mxu1 }
 0x613   : > { %v1696_v59 = vadd.f32 %v3328_v57, %v1695_v58  ;;  %v3069_v58 = vld [vmem:[%s4366_s14 + $0x4] sm:$0xf0] }
 0x615   : > { %v1700_v60 = vadd.f32 %v1696_v59, %v4459_v28  ;;  %v3068_v59 = vld [vmem:[%s4366_s14 + $0x4] sm:$0xf] }
 0x617   : > { %1704 = vadd.xlane.f32.xlu2 %v1700_v60 }
 0x61a   : > { %v1697_v61 = vpop.f32.mrf.mxu1 }
 0x61b   : > { %v1698_v62 = vadd.f32 %v3328_v57, %v1697_v61  ;;  %v2837_v57 = vld [vmem:[%s4366_s14] sm:$0xf] }
 0x61c   : > { %v2838_v61 = vor.u32 %v3069_v58, %v2837_v57 }
 0x61d   : > { %v1701_v63 = vadd.f32 %v1698_v62, %v4461_v29  ;;  %v2839_v62 = vld [vmem:[%s4366_s14 + $0x8] sm:$0xf0] }
 0x61e   : > { %v2842_v0 = vor.u32 %v3068_v59, %v2839_v62  ;;  %1871 = vmatpush.bf16.msrb.mxu2 %v2838_v61 }
 0x61f   : > { %1706 = vadd.xlane.f32.xlu0 %v1701_v63 }
 0x620   : > { %1885 = vmatpush.bf16.msra.mxu3 %v2842_v0 }
 0x68a   : > { %v1705_v28 = vpop.xlane.xlu2 %1704 }
 0x68b   : > { %v1715_v7 = vmul.f32 %v4546_v6, %v1705_v28 }
 0x68d   : > { %v4549_v8 = vsub.f32 %v1700_v60, %v1715_v7 }
 0x68f   : > { %v1719_v29 = vmul.f32 %v4549_v8, %v4549_v8 }
 0x691   : > { %1721 = vadd.xlane.f32.xlu1 %v1719_v29 }
 0x692   : > { %v1707_v9 = vpop.xlane.xlu0 %1706 }
 0x693   : > { %v1716_v10 = vmul.f32 %v4546_v6, %v1707_v9 }
 0x695   : > { %v4554_v11 = vsub.f32 %v1701_v63, %v1716_v10 }
 0x697   : > { %v1720_v12 = vmul.f32 %v4554_v11, %v4554_v11 }
 0x699   : > { %1723 = vadd.xlane.f32.xlu2 %v1720_v12 }
 0x704   : > { %v1722_v60 = vpop.xlane.xlu1 %1721 }
 0x705   : > { %v1725_v63 = vmul.f32 %v1722_v60, %v4546_v6 }
 0x707   : > { %v1727_v1 = vadd.f32 1e-05, %v1725_v63 }
 0x709   : > { %3352 = vrsqrt.f32 %v1727_v1  ;;  %vm1735_vm12 = vweird.f32 %v1727_v1 }
 0x70c   : > { %v1724_v2 = vpop.xlane.xlu2 %1723 }
 0x70d   : > { %v1726_v3 = vmul.f32 %v1724_v2, %v4546_v6 }
 0x70f   : > { %v3353_v4 = vpop.eup %3352  ;;  %v1728_v5 = vadd.f32 1e-05, %v1726_v3 }
 0x710   : > { %v1730_v28 = vmul.f32 %v3353_v4, %v1727_v1  ;;  %vm1736_vm11 = vweird.f32 %v3353_v4 }
 0x711   : > { %3354 = vrsqrt.f32 %v1728_v5  ;;  %vm1737_vm13 = vmor %vm1735_vm12, %vm1736_vm11  ;;  %vm1745_vm15 = vweird.f32 %v1728_v5 }
 0x712   : > { %v1731_v7 = vmul.f32 %v3353_v4, %v1730_v28 }
 0x714   : > { %v1732_v29 = vmul.f32 0.5, %v1731_v7 }
 0x716   : > { %v1733_v9 = vsub.f32 1.5, %v1732_v29 }
 0x717   : > { %v3355_v10 = vpop.eup %3354 }
 0x718   : > { %v1734_v12 = vmul.f32 %v3353_v4, %v1733_v9  ;;  %v1740_v13 = vmul.f32 %v3355_v10, %v1728_v5  ;;  %vm1746_vm14 = vweird.f32 %v3355_v10 }
 0x719   : > { %vm1747_vm0 = vmor %vm1745_vm15, %vm1746_vm14 }
 0x71a   : > { %v1741_v14 = vmul.f32 %v3355_v10, %v1740_v13  ;;  %v1738_v15 = vsel %vm1737_vm13, %v3353_v4, %v1734_v12 }
 0x71b   : > { %v1749_v18 = vmul.f32 %v1738_v15, %v4549_v8 }
 0x71c   : > { %v1742_v16 = vmul.f32 0.5, %v1741_v14 }
 0x71d   : > { %v1754_v23 = vmul.f32 %v3329_v19, %v1749_v18 }
 0x71e   : > { %v1743_v17 = vsub.f32 1.5, %v1742_v16 }
 0x71f   : > { %v4601_v25 = vadd.f32 %v3330_v24, %v1754_v23 }
 0x720   : > { %v1744_v20 = vmul.f32 %v3355_v10, %v1743_v17 }
 0x722   : > { %v1748_v21 = vsel %vm1747_vm0, %v3355_v10, %v1744_v20 }
 0x723   : > { %v1750_v22 = vmul.f32 %v1748_v21, %v4554_v11  ;;  %v3091_v11 = vld [vmem:[%s4858_s27 + $0x38] sm:$0xff] }
 0x724   : > { %2062 = vmatpush.bf16.msrb.mxu0 %v3091_v11 }
 0x725   : > { %v1755_v8 = vmul.f32 %v3329_v19, %v1750_v22 }
 0x727   : > { %v4603_v26 = vadd.f32 %v3330_v24, %v1755_v8 }
 0x728   : > { %2063 = vmatpush.bf16.msrb.mxu0 %v3090_v31 }
 0x729   : > { %v1761_v27 = vpack.c.bf16 %v4603_v26, %v4601_v25 }
 0x72b   : > { %1872 = vmatmul.bf16.vlgmr.msrb.gmra.mxu2 %v1761_v27  ;;  %1886 = vmatmul.bf16.vlgmr.msra.gmra.mxu3 %v1761_v27 }
 0x72c   : > { %2064 = vmatpush.bf16.msrb.mxu0 %v3089_v34  ;;  %v3331_v34 = vld [vmem:[%s1071_s8] ss:$0 sm:$0xff] }
 0x730   : > { %2065 = vmatpush.bf16.msrb.mxu0 %v3088_v36 }
 0x734   : > { %2066 = vmatpush.bf16.msrb.mxu0 %v3087_v38 }
 0x738   : > { %2067 = vmatpush.bf16.msrb.mxu0 %v3086_v40 }
 0x73c   : > { %2068 = vmatpush.bf16.msrb.mxu0 %v3085_v43 }
 0x740   : > { %2069 = vmatpush.bf16.msrb.mxu0 %v3084_v48 }
 0x7ae   : > { %v1873_v46 = vpop.f32.mrf.mxu2  ;;  %v1887_v47 = vpop.f32.mrf.mxu3 }
 0x7af   : > { %v1874_v50 = vadd.f32 %v1873_v46, %v1780_v44  ;;  %v1888_v51 = vadd.f32 %v1887_v47, %v1781_v45 }
 0x7b1   : > { %v1892_v52 = vmul.f32 %v1874_v50, %v1874_v50  ;;  %v1893_v53 = vmul.f32 %v1888_v51, %v1888_v51 }
 0x7b3   : > { %v1896_v54 = vmul.f32 %v1892_v52, %v1874_v50  ;;  %v1897_v55 = vmul.f32 %v1893_v53, %v1888_v51 }
 0x7b5   : > { %v1900_v56 = vmul.f32 0.044715, %v1896_v54  ;;  %v1901_v57 = vmul.f32 0.044715, %v1897_v55 }
 0x7b6   : > { %v1875_v58 = vpop.f32.mrf.mxu2  ;;  %v1889_v59 = vpop.f32.mrf.mxu3 }
 0x7b7   : > { %v1904_v60 = vadd.f32 %v1900_v56, %v1874_v50  ;;  %v1905_v61 = vadd.f32 %v1901_v57, %v1888_v51  ;;  %v1876_v62 = vadd.f32 %v1875_v58, %v1780_v44  ;;  %v1890_v63 = vadd.f32 %v1889_v59, %v1781_v45 }
 0x7b9   : > { %v1908_v0 = vmul.f32 0.7978846, %v1904_v60  ;;  %v1894_v1 = vmul.f32 %v1876_v62, %v1876_v62  ;;  %v1895_v2 = vmul.f32 %v1890_v63, %v1890_v63  ;;  %v1909_v3 = vmul.f32 0.7978846, %v1905_v61 }
 0x7bb   : > { %v1898_v4 = vmul.f32 %v1894_v1, %v1876_v62  ;;  %v1899_v5 = vmul.f32 %v1895_v2, %v1890_v63  ;;  %3356 = vtanh.f32 %v1908_v0  ;;  %v3332_v0 = vld [vmem:[%s1074_s23] ss:$0 sm:$0xff]  ;;  %s4864_s23 = sld [smem:[#allocation39_spill]] }
 0x7bc   : > { %3358 = vtanh.f32 %v1909_v3  ;;  %v3333_v2 = vld [vmem:[%s1077_s26] ss:$0 sm:$0xff] }
 0x7bd   : > { %v1902_v28 = vmul.f32 0.044715, %v1898_v4  ;;  %v1903_v7 = vmul.f32 0.044715, %v1899_v5 }
 0x7bf   : > { %v1906_v29 = vadd.f32 %v1902_v28, %v1876_v62  ;;  %v1907_v9 = vadd.f32 %v1903_v7, %v1890_v63 }
 0x7c1   : > { %v1910_v10 = vmul.f32 0.7978846, %v1906_v29  ;;  %v1911_v12 = vmul.f32 0.7978846, %v1907_v9  ;;  %v3357_v13 = vpop.eup %3356  ;;  %p2963_p5 = scmp.ne.s32.totalorder %s4864_s23, 1 }
 0x7c2   : > { %v3359_v14 = vpop.eup %3358  ;;  %v1916_v15 = vadd.f32 1.0, %v3357_v13  ;;  %s4865_s21 = sld [smem:[#allocation72_spill]] (!%p2963_p5) }
 0x7c3   : > { %3360 = vtanh.f32 %v1910_v10  ;;  %v1917_v16 = vadd.f32 1.0, %v3359_v14  ;;  %s4866_s13 = sld [smem:[#allocation74_spill]] (!%p2963_p5) }
 0x7c4   : > { %3362 = vtanh.f32 %v1911_v12  ;;  %v1920_v19 = vmul.f32 0.5, %v1916_v15 }
 0x7c5   : > { %v1921_v21 = vmul.f32 0.5, %v1917_v16 }
 0x7c6   : > { %v1924_v8 = vmul.f32 %v1920_v19, %v1874_v50 }
 0x7c7   : > { %v1925_v11 = vmul.f32 %v1921_v21, %v1888_v51 }
 0x7c9   : > { %v3361_v17 = vpop.eup %3360 }
 0x7ca   : > { %v3363_v18 = vpop.eup %3362  ;;  %v1918_v20 = vadd.f32 1.0, %v3361_v17 }
 0x7cb   : > { %v1919_v22 = vadd.f32 1.0, %v3363_v18 }
 0x7cc   : > { %v1922_v23 = vmul.f32 0.5, %v1918_v20 }
 0x7cd   : > { %v1923_v24 = vmul.f32 0.5, %v1919_v22 }
 0x7ce   : > { %v1926_v27 = vmul.f32 %v1922_v23, %v1876_v62 }
 0x7cf   : > { %v1927_v30 = vmul.f32 %v1923_v24, %v1890_v63 }
 0x7d0   : > { %v1928_v31 = vpack.c.bf16 %v1926_v27, %v1924_v8 }
 0x7d1   : > { %v1929_v33 = vpack.c.bf16 %v1927_v30, %v1925_v11 }
 0x7d2   : > { %2070 = vmatmul.bf16.vlgmr.msrb.gmra.mxu0 %v1928_v31 }
 0x7d3   : > { %2084 = vmatmul.bf16.vlgmr.msra.gmra.mxu1 %v1929_v33 }
 0x84f   : > { %v2071_v35 = vpop.f32.mrf.mxu0 }
 0x850   : > { %v2072_v36 = vadd.f32 %v3331_v34, %v2071_v35  ;;  %v2085_v37 = vpop.f32.mrf.mxu1 }
 0x852   : > { %v2086_v38 = vadd.f32 %v2085_v37, %v2072_v36 }
 0x854   : > { %v2090_v39 = vadd.f32 %v2086_v38, %v4601_v25 }
 0x856   : > { %2094 = vadd.xlane.f32.xlu0 %v2090_v39 }
 0x857   : > { %v2073_v40 = vpop.f32.mrf.mxu0 }
 0x858   : > { %v2074_v41 = vadd.f32 %v3331_v34, %v2073_v40  ;;  %v2087_v42 = vpop.f32.mrf.mxu1 }
 0x85a   : > { %v2088_v43 = vadd.f32 %v2087_v42, %v2074_v41 }
 0x85c   : > { %v2091_v32 = vadd.f32 %v2088_v43, %v4603_v26 }
 0x85e   : > { %2096 = vadd.xlane.f32.xlu2 %v2091_v32 }
 0x8c9   : > { %v2095_v44 = vpop.xlane.xlu0 %2094 }
 0x8ca   : > { %v2098_v45 = vmul.f32 %v2095_v44, %v4546_v6 }
 0x8cc   : > { %v2100_v46 = vsub.f32 %v2090_v39, %v2098_v45 }
 0x8ce   : > { %v2102_v47 = vmul.f32 %v2100_v46, %v2100_v46 }
 0x8d0   : > { %2104 = vadd.xlane.f32.xlu1 %v2102_v47 }
 0x8d1   : > { %v2097_v48 = vpop.xlane.xlu2 %2096 }
 0x8d2   : > { %v2099_v49 = vmul.f32 %v2097_v48, %v4546_v6 }
 0x8d4   : > { %v2101_v50 = vsub.f32 %v2091_v32, %v2099_v49 }
 0x8d6   : > { %v2103_v51 = vmul.f32 %v2101_v50, %v2101_v50 }
 0x8d8   : > { %2106 = vadd.xlane.f32.xlu0 %v2103_v51 }
 0x943   : > { %v2105_v25 = vpop.xlane.xlu1 %2104 }
 0x944   : > { %v2108_v52 = vmul.f32 %v2105_v25, %v4546_v6 }
 0x946   : > { %v2110_v53 = vadd.f32 1e-05, %v2108_v52 }
 0x948   : > { %3364 = vrsqrt.f32 %v2110_v53  ;;  %vm2118_vm2 = vweird.f32 %v2110_v53 }
 0x94b   : > { %v2107_v26 = vpop.xlane.xlu0 %2106 }
 0x94c   : > { %v2109_v54 = vmul.f32 %v2107_v26, %v4546_v6 }
 0x94e   : > { %v3365_v55 = vpop.eup %3364  ;;  %v2111_v56 = vadd.f32 1e-05, %v2109_v54 }
 0x94f   : > { %v2113_v57 = vmul.f32 %v3365_v55, %v2110_v53  ;;  %vm2119_vm1 = vweird.f32 %v3365_v55 }
 0x950   : > { %3366 = vrsqrt.f32 %v2111_v56  ;;  %vm2120_vm3 = vmor %vm2118_vm2, %vm2119_vm1  ;;  %vm2128_vm5 = vweird.f32 %v2111_v56 }
 0x951   : > { %v2114_v58 = vmul.f32 %v3365_v55, %v2113_v57 }
 0x953   : > { %v2115_v59 = vmul.f32 0.5, %v2114_v58 }
 0x955   : > { %v2116_v60 = vsub.f32 1.5, %v2115_v59 }
 0x956   : > { %v3367_v61 = vpop.eup %3366 }
 0x957   : > { %v2117_v62 = vmul.f32 %v3365_v55, %v2116_v60  ;;  %v2123_v63 = vmul.f32 %v3367_v61, %v2111_v56  ;;  %vm2129_vm4 = vweird.f32 %v3367_v61 }
 0x958   : > { %vm2130_vm6 = vmor %vm2128_vm5, %vm2129_vm4 }
 0x959   : > { %v2121_v6 = vsel %vm2120_vm3, %v3365_v55, %v2117_v62  ;;  %v2124_v1 = vmul.f32 %v3367_v61, %v2123_v63 }
 0x95a   : > { %v2132_v3 = vmul.f32 %v2121_v6, %v2100_v46 }
 0x95b   : > { %v2125_v4 = vmul.f32 0.5, %v2124_v1 }
 0x95c   : > { %v2137_v5 = vmul.f32 %v3332_v0, %v2132_v3 }
 0x95d   : > { %v2126_v28 = vsub.f32 1.5, %v2125_v4 }
 0x95e   : > { %v2142_v7 = vadd.f32 %v3333_v2, %v2137_v5 }
 0x95f   : > { %v2127_v29 = vmul.f32 %v3367_v61, %v2126_v28 }
 0x960   : > { %2144 = vst [vmem:[#allocation2] sm:$0xff] %v2142_v7 }
 0x961   : > { %v2131_v9 = vsel %vm2130_vm6, %v3367_v61, %v2127_v29 }
 0x962   : > { %v2133_v10 = vmul.f32 %v2131_v9, %v2101_v50 }
 0x964   : > { %v2138_v12 = vmul.f32 %v3332_v0, %v2133_v10  ;;  %2149 = sbr.rel (%p2963_p5) target bundleno = 2707 (0xa93), region = 156 }
 0x966   : > { %v2143_v13 = vadd.f32 %v3333_v2, %v2138_v12 }
 0x968   : > { %2145 = vst [vmem:[#allocation2 + $0x8] sm:$0xff] %v2143_v13 }
 0x969   : > { %v3107_v14 = vld [vmem:[#allocation17 + $0x38] sm:$0xff]  ;;  %v3106_v15 = vld [vmem:[#allocation17 + $0x30] sm:$0xff]  ;;  %v3105_v18 = vld [vmem:[#allocation17 + $0x28] sm:$0xff]  ;;  %v2151_v23 = vpack.c.bf16 %v2143_v13, %v2143_v13  ;;  %v2150_v27 = vpack.c.bf16 %v2142_v7, %v2142_v7  ;;  %vm2177_vm7 = vcmask 1041409  }
 0x96a   : > { %2229 = vmatpush.bf16.msra.mxu0 %v3107_v14  ;;  %v3115_v16 = vld [vmem:[#allocation18 + $0x38] sm:$0xff]  ;;  %v3114_v17 = vld [vmem:[#allocation18 + $0x30] sm:$0xff]  ;;  %v3113_v19 = vld [vmem:[#allocation18 + $0x28] sm:$0xff] }
 0x96b   : > { %2312 = vmatpush.bf16.msra.mxu1 %v3115_v16  ;;  %v3104_v20 = vld [vmem:[#allocation17 + $0x20] sm:$0xff]  ;;  %v3103_v22 = vld [vmem:[#allocation17 + $0x18] sm:$0xff]  ;;  %v3102_v8 = vld [vmem:[#allocation17 + $0x10] sm:$0xff]  ;;  %v2175_v11 = vunpack.c.l.b16 %v2151_v23  ;;  %v2174_v33 = vunpack.c.l.b16 %v2150_v27 }
 0x96c   : > { %v3112_v21 = vld [vmem:[#allocation18 + $0x20] sm:$0xff]  ;;  %v3111_v24 = vld [vmem:[#allocation18 + $0x18] sm:$0xff]  ;;  %v3110_v30 = vld [vmem:[#allocation18 + $0x10] sm:$0xff] }
 0x96d   : > { %v3101_v31 = vld [vmem:[#allocation17 + $0x8] sm:$0xff]  ;;  %v2176_v34 = vrot.slane %v2175_v11, 7  ;;  %v3100_v35 = vld [vmem:[#allocation17] sm:$0xff] }
 0x96e   : > { %2230 = vmatpush.bf16.msra.mxu0 %v3106_v15  ;;  %v3109_v38 = vld [vmem:[#allocation18 + $0x8] sm:$0xff]  ;;  %v3108_v39 = vld [vmem:[#allocation18] sm:$0xff] }
 0x96f   : > { %2313 = vmatpush.bf16.msra.mxu1 %v3114_v17  ;;  %v2178_v36 = vsel %vm2177_vm7, %v2176_v34, %v2174_v33  ;;  %v3368_v40 = vld [vmem:[%s4865_s21] ss:$0 sm:$0xff] }
 0x970   : > { %v2179_v37 = vpack.c.b16 %v2178_v36, %v2178_v36  ;;  %v3369_v45 = vld [vmem:[%s4866_s13] ss:$0 sm:$0xff] }
 0x972   : > { %2231 = vmatpush.bf16.msra.mxu0 %v3105_v18 }
 0x973   : > { %2314 = vmatpush.bf16.msra.mxu1 %v3113_v19 }
 0x976   : > { %2232 = vmatpush.bf16.msra.mxu0 %v3104_v20 }
 0x977   : > { %2315 = vmatpush.bf16.msra.mxu1 %v3112_v21 }
 0x97a   : > { %2233 = vmatpush.bf16.msra.mxu0 %v3103_v22 }
 0x97b   : > { %2316 = vmatpush.bf16.msra.mxu1 %v3111_v24 }
 0x97e   : > { %2234 = vmatpush.bf16.msra.mxu0 %v3102_v8 }
 0x97f   : > { %2317 = vmatpush.bf16.msra.mxu1 %v3110_v30 }
 0x982   : > { %2235 = vmatpush.bf16.msra.mxu0 %v3101_v31 }
 0x983   : > { %2318 = vmatpush.bf16.msra.mxu1 %v3109_v38 }
 0x986   : > { %2236 = vmatpush.bf16.msra.mxu0 %v3100_v35 }
 0x987   : > { %2319 = vmatpush.bf16.msra.mxu1 %v3108_v39 }
 0x989   : > { %2237 = vmatmul.bf16.vlgmr.msra.gmra.mxu0 %v2179_v37 }
 0xa06   : > { %v2238_v41 = vpop.f32.mrf.mxu0 }
 0xa07   : > { %v2239_v42 = vadd.f32 %v3368_v40, %v2238_v41 }
 0xa09   : > { %v2242_v43 = vmax.f32 %v2239_v42, 0.0 }
 0xa0b   : > { %v2243_v32 = vpack.c.bf16 %v2242_v43, %v2242_v43 }
 0xa0d   : > { %2320 = vmatmul.bf16.vlgmr.msra.gmra.mxu1 %v2243_v32 }
 0xa0e   : > { %v2240_v44 = vpop.f32.mrf.mxu0 }
 0xa8a   : > { %v2321_v46 = vpop.f32.mrf.mxu1 }
 0xa8b   : > { %v2322_v47 = vadd.f32 %v3369_v45, %v2321_v46 }
 0xa8d   : > { %v2326_v48 = vrot.slane %v2322_v47, 1  ;;  %2328 = vst [vmem:[%s4422_s9] sm:$0x1] %v2322_v47 }
 0xa8f   : > { %2329 = vst [vmem:[%s4422_s9 + $0x1] sm:$0x1] %v2326_v48 }
 0xa92   : > { %v2323_v49 = vpop.f32.mrf.mxu1 }
 0xa93 PF: > { %s4867_s22 = sld [smem:[#allocation40_spill]]  ;;  %s2342_s18 = sshll.u32 %s4422_s9, 4  ;;  %s2343_s18 = int_to_ptr.vmem [resolvable:$true] %s2342_s18 }
 0xa94   : > { %s4869_s10 = sld [smem:[#allocation75_spill]]  ;;  %s2331_s4 = scalar_lea.sflag [#allocation5], %s4294_s3 }
 0xa99   : > { %s3029_s29 = sshll.u32 %s4867_s22, 1 }
 0xa9a   : > { %s2341_s16 = scalar_lea.hbm %s4869_s10, %s3029_s29  ;;  %s3750_s2 = scalar_lea.hbm %s4869_s10, 4 }
 0xa9b   : > { %s2344_s27 = sshll.u32 %s2341_s16, 4  ;;  %s2345_s27 = int_to_ptr.hbm [resolvable:$true] %s2344_s27 }
 0xa9c   : > { %s3744_s17 = sshra.s32 %s2345_s27, 4  ;;  %s3745_s17 = int_to_ptr.hbm [resolvable:$true] %s3744_s17 }
 0xa9d   : > { %s3746_s12 = scalar_lea.hbm %s3745_s17, 2  ;;  %p3751_p3 = scmp.lt.s32.totalorder %s3745_s17, %s4869_s10 }
 0xa9e   : > { %p3747_p8 = scmp.ne.s32.totalorder %s3745_s17, %s3746_s12  ;;  %p3752_p4 = scmp.lt.s32.totalorder %s3750_s2, %s3746_s12 }
 0xaa0   : > { %p3748_p12 = pnand %p3747_p8, %p4148_p11  ;;  %p3753_p7 = por %p3752_p4, %p3751_p3 }
 0xaa2   : > { %p3749_p0 = pneg %p3748_p12 }
 0xaa4   : > { %p3754_p9 = pnand %p3753_p7, %p3749_p0 }
 0xaa6   : > { %3757 = shalt.err (!%p3754_p9)
}
 0xaa7   : > { %s3913_s3 = smov 16   ;;  %s3914_s9 = smov 1  }
 0xaa8   : > { %3154 = dma.vmem_to_hbm [thread:$0]  (%p4148_p11), %s2343_s18, 32, %s2345_s27, %s2331_s4, %s3913_s3, %s3913_s3, %s3914_s9  }
 0xaa9 PF: > { %s4870_s30 = sld [smem:[#allocation43_spill]] }
 0xaaa   : > { %s4871_s11 = sld [smem:[#allocation36_spill]] }
 0xaaf   : > { %p3207_p13 = scmp.ge.s32.totalorder %s4870_s30, 2 }
 0xab0   : > { %s2359_s14 = sand.u32 1, %s4871_s11  }
 0xab1   : > { %p3195_p2 = pnand %p3207_p13, %p4169_p6  ;;  %s2360_s25 = scalar_lea.sflag [#allocation5], %s2359_s14 }
 0xab3   : > { %p3196_p10 = pneg %p3195_p2 }
 0xab5   : > { %3851 = dma.done.wait (%p3196_p10), %s2360_s25, 32  }
 0xab6   : > { %3853 = vsyncadd (%p3196_p10), %s2360_s25, 4294967264  ;;  %s41_s4 = sadd.s32 1, %s4870_s30   ;;  %s4873_s1 = sld [smem:[#allocation34_spill]] }
 0xab7   : > { %p38_p1 = scmp.ge.s32.totalorder %s41_s4, 6   ;;  %s4874_s22 = sld [smem:[#allocation35_spill]] }
 0xab8   : > { %s4875_s23 = sld [smem:[#allocation51_spill]] }
 0xab9   : > { %s4876_s24 = sld [smem:[#allocation37_spill]] }
 0xaba   : > { %s4877_s2 = sld [smem:[#allocation38_spill]] }
 0xabb   : > { %s4878_s25 = sld [smem:[#allocation52_spill]]  ;;  %40 = sbr.rel (!%p38_p1) target bundleno = 35 (0x23), region = 266 }
 0xabc   : > { %s4879_s3 = sld [smem:[#allocation41_spill]] }
 0xabd   : > { %s4880_s26 = sld [smem:[#allocation42_spill]] }
 0xabe   : > { %s4881_s27 = sld [smem:[#allocation47_spill]] }
 0xabf   : > { %s4882_s28 = sld [smem:[#allocation49_spill]] }
 0xac0   :  { %2366 = vsyncpa [#allocation4], 1 }
 0xac1   :  { %2368 = vsyncpa [#allocation4 + $0x1], 1 }
 0xac2   :  { %2369 = vsyncpa [#allocation7], 1 }
 0xac3   :  { %2371 = vsyncpa [#allocation7 + $0x1], 1 }
 0xac4   :  { %2372 = vsyncpa [#allocation10], 1 }
 0xac5   :  { %2373 = vsyncpa [#allocation19], 1 }
 0xac6   :  { %2374 = vsyncpa [#allocation5], 1 }
 0xac7   :  { %2376 = vsyncpa [#allocation5 + $0x1], 1 }

</bundles_post_ra>
